<compile_context>
chip_gen: v6e
topology: v6e:2x2x1
jax: 0.10.0
libtpu: 0.0.40
codegen_flags: <defaults>
</compile_context>

<pallas_src>
import jax
import jax.numpy as jnp
from jax.experimental import pallas as pl
from jax.experimental.pallas import tpu as pltpu

EPS = 1e-5          # InstanceNorm2d default eps
LEAKY_SLOPE = 0.2   # LeakyReLU negative_slope


def _make_cnn_kernel(num_weights, act_dtype):
    """Build a kernel for `num_weights` 1x1 convs (last one is conv + sigmoid)."""

    def kernel(*refs):
        x_ref = refs[0]                       # (1, Cin, HW), act_dtype
        w_refs = refs[1:1 + num_weights]      # each (Cout_i, Cin_i), act_dtype
        o_ref = refs[1 + num_weights]         # (1, Cout, HW), f32

        h = x_ref[0]                          # (Cin, HW): channels on sublanes
        hw = h.shape[-1]
        inv_hw = 1.0 / float(hw)
        # Ones RHS for MXU-side lane reductions (8-wide to stay tile-friendly;
        # only column 0 is consumed).
        ones = jnp.ones((hw, 8), jnp.float32)

        # Hidden blocks: conv1x1 -> InstanceNorm -> LeakyReLU(0.2)
        for w_ref in w_refs[:-1]:
            # 1x1 conv == channel matmul on the MXU, f32 accumulation.
            z = jnp.dot(w_ref[...], h, preferred_element_type=jnp.float32)  # (C, HW) f32

            # InstanceNorm stats on the (idle) MXU instead of the XLU.
            s = jnp.dot(z, ones, preferred_element_type=jnp.float32)[:, :1]        # (C, 1)
            ss = jnp.dot(z * z, ones, preferred_element_type=jnp.float32)[:, :1]   # (C, 1)
            mean = s * inv_hw
            var = jnp.maximum(ss * inv_hw - mean * mean, 0.0)   # biased var, clamped
            scale = jax.lax.rsqrt(var + EPS)                    # (C, 1)
            shift = (-mean) * scale                             # (C, 1)

            # Normalize + LeakyReLU on the hot (C, HW) path in act_dtype
            # (bf16 on v6e/v7x -> 2x VPU element rate, half the VMEM traffic).
            za = z.astype(act_dtype)
            za = za * scale.astype(act_dtype) + shift.astype(act_dtype)
            h = jnp.maximum(za, LEAKY_SLOPE * za)               # slope in (0,1)

        # Final block: conv1x1 -> Sigmoid (EUP), f32 output.
        out = jnp.dot(w_refs[-1][...], h, preferred_element_type=jnp.float32)
        o_ref[0] = jax.nn.sigmoid(out).astype(o_ref.dtype)

    return kernel


def _pick_act_dtype():
    """bf16 activations on chips with bf16 VALUs (v6e / v7x), f32 otherwise."""
    try:
        kind = jax.devices()[0].device_kind.lower()
    except Exception:
        return jnp.float32
    if "v6" in kind or "v7" in kind or "tpu7" in kind:
        return jnp.bfloat16
    return jnp.float32


def _vmem_budget_bytes(hw, cin, cout, cmax, weights, act_bytes):
    f32 = 4
    io = 2 * act_bytes * hw * cin + 2 * f32 * hw * cout     # double-buffered in/out blocks
    act = (3 * f32 + 2 * act_bytes) * hw * cmax             # bound on live activations
    wts = sum(int(w.size) for w in weights) * act_bytes
    budget = io + act + wts + (2 << 20)
    try:
        cap = int(0.85 * pltpu.get_tpu_info().vmem_capacity_bytes)   # chip-aware (64 MiB on v7x)
    except Exception:
        cap = int(0.85 * (64 << 20))                                  # conservative fallback
    return int(max(min(max(budget, 16 << 20), cap), 1 << 20))


def cnn_forward(image_nchw, weights, act_dtype=None):
    """image_nchw: (N, in_chans, H, W).  weights: list of (Cout_i, Cin_i) matrices."""
    N, Cin, H, W = image_nchw.shape
    Cout = weights[-1].shape[0]
    HW = H * W
    cmax = max(Cin, Cout, max(int(w.shape[0]) for w in weights))
    if act_dtype is None:
        act_dtype = _pick_act_dtype()
    act_bytes = jnp.dtype(act_dtype).itemsize

    # NCHW -> (N, C, HW): a pure reshape, no transpose needed for this layout.
    x = image_nchw.reshape(N, Cin, HW).astype(act_dtype)
    w_cast = [w.astype(act_dtype) for w in weights]
    w_specs = [pl.BlockSpec(w.shape, lambda n: (0, 0)) for w in w_cast]

    out = pl.pallas_call(
        _make_cnn_kernel(len(weights), act_dtype),
        out_shape=jax.ShapeDtypeStruct((N, Cout, HW), jnp.float32),
        grid_spec=pltpu.PrefetchScalarGridSpec(
            num_scalar_prefetch=0,
            grid=(N,),
            in_specs=[pl.BlockSpec((1, Cin, HW), lambda n: (n, 0, 0))] + w_specs,
            out_specs=pl.BlockSpec((1, Cout, HW), lambda n: (n, 0, 0)),
        ),
        compiler_params=pltpu.CompilerParams(
            dimension_semantics=("parallel",),   # shards samples across TCs on v7x
            vmem_limit_bytes=_vmem_budget_bytes(HW, Cin, Cout, cmax, weights, act_bytes),
        ),
    )(x, *w_cast)

    # (N, Cout, HW) -> NCHW: again a pure reshape.
    return out.reshape(N, Cout, H, W)


def make_weights(key, in_chans, out_chans, chans, num_layers):
    """Deterministic synthetic weights in (Cout, Cin) layout (1x1 conv matrices)."""
    dims = [(chans, in_chans)]
    for _ in range(num_layers - 2):
        dims.append((chans, chans))
    dims.append((out_chans, chans))

    weights = []
    for i, (cout, cin) in enumerate(dims):
        k = jax.random.fold_in(key, i)
        bound = 1.0 / (float(cin) ** 0.5)
        weights.append(jax.random.uniform(k, (cout, cin), jnp.float32, -bound, bound))
    return weights


def cnn_reference(image_nchw, weights):
    """Pure-JAX f32 reference mirroring the PyTorch module."""
    N, C, H, W = image_nchw.shape
    h = image_nchw.reshape(N, C, H * W).astype(jnp.float32)
    for w in weights[:-1]:
        h = jnp.einsum("oc,nch->noh", w, h)
        mean = jnp.mean(h, axis=-1, keepdims=True)
        var = jnp.mean((h - mean) ** 2, axis=-1, keepdims=True)   # biased (PyTorch)
        h = (h - mean) * jax.lax.rsqrt(var + EPS)
        h = jnp.where(h >= 0.0, h, LEAKY_SLOPE * h)
    out = jnp.einsum("oc,nch->noh", weights[-1], h)
    return jax.nn.sigmoid(out).reshape(N, weights[-1].shape[0], H, W)


if __name__ == "__main__":
    # Small, deterministic example consistent with the module's forward.
    N, in_chans, out_chans, chans, num_layers = 2, 4, 4, 32, 5
    H = W = 16

    key = jax.random.PRNGKey(0)
    k_img, k_w = jax.random.split(key)
    image = jax.random.normal(k_img, (N, in_chans, H, W), jnp.float32)
    weights = make_weights(k_w, in_chans, out_chans, chans, num_layers)

    out = cnn_forward(image, weights)
    jax.block_until_ready(out)
    assert out.shape == (N, out_chans, H, W), out.shape

    # Correctness check against the pure-JAX reference (tolerance depends on
    # whether bf16 activations are enabled on this chip).
    ref = cnn_reference(image, weights)
    tol = 8e-2 if _pick_act_dtype() == jnp.bfloat16 else 1e-3
    max_err = float(jnp.max(jnp.abs(out - ref)))
    assert max_err < tol, f"max abs err {max_err} vs tol {tol}"

    print("KERNEL_OK")
</pallas_src>

<mosaic_0001>
module attributes {stable_mosaic.version = 11 : i64} {
  func.func @kernel(%arg0: i32, %arg1: memref<1x4x256xf32, #tpu.memory_space<vmem>>, %arg2: memref<32x4xf32, #tpu.memory_space<vmem>>, %arg3: memref<32x32xf32, #tpu.memory_space<vmem>>, %arg4: memref<32x32xf32, #tpu.memory_space<vmem>>, %arg5: memref<32x32xf32, #tpu.memory_space<vmem>>, %arg6: memref<4x32xf32, #tpu.memory_space<vmem>>, %arg7: memref<1x4x256xf32, #tpu.memory_space<vmem>>) attributes {dimension_semantics = [#tpu.dimension_semantics<parallel>], iteration_bounds = array<i64: 2>, scalar_prefetch = 0 : i64, scratch_operands = 0 : i64, tpu.core_type = #tpu.core_type<tc>, window_params = [{transform_indices = @transform_0, window_bounds = array<i64: 1, 4, 256>}, {pipeline_mode = #tpu.pipeline_mode<synchronous>, transform_indices = @transform_1, window_bounds = array<i64: 32, 4>}, {pipeline_mode = #tpu.pipeline_mode<synchronous>, transform_indices = @transform_2, window_bounds = array<i64: 32, 32>}, {pipeline_mode = #tpu.pipeline_mode<synchronous>, transform_indices = @transform_3, window_bounds = array<i64: 32, 32>}, {pipeline_mode = #tpu.pipeline_mode<synchronous>, transform_indices = @transform_4, window_bounds = array<i64: 32, 32>}, {pipeline_mode = #tpu.pipeline_mode<synchronous>, transform_indices = @transform_5, window_bounds = array<i64: 4, 32>}, {transform_indices = @transform_6, window_bounds = array<i64: 1, 4, 256>}]} {
    %c0 = arith.constant 0 : index
    %c0_0 = arith.constant 0 : index
    %c0_1 = arith.constant 0 : index
    %0 = vector.load %arg1[%c0, %c0_0, %c0_1] : memref<1x4x256xf32, #tpu.memory_space<vmem>>, vector<1x4x256xf32>
    %1 = vector.shape_cast %0 : vector<1x4x256xf32> to vector<4x256xf32>
    %cst = arith.constant 1.000000e+00 : f32
    %2 = vector.broadcast %cst : f32 to vector<256x8xf32>
    %c0_2 = arith.constant 0 : index
    %c0_3 = arith.constant 0 : index
    %3 = vector.load %arg2[%c0_2, %c0_3] : memref<32x4xf32, #tpu.memory_space<vmem>>, vector<32x4xf32>
    %cst_4 = arith.constant dense<0.000000e+00> : vector<32x256xf32>
    %4 = tpu.matmul %3, %1, %cst_4 {dimension_numbers = #tpu.dot_dimension_numbers<[1], [0], [0], [1], [0, 0, 1, 1], [], []>} : vector<32x4xf32>, vector<4x256xf32>, vector<32x256xf32> -> vector<32x256xf32>
    %cst_5 = arith.constant dense<0.000000e+00> : vector<32x8xf32>
    %5 = tpu.matmul %4, %2, %cst_5 {dimension_numbers = #tpu.dot_dimension_numbers<[1], [0], [0], [1], [0, 0, 1, 1], [], []>} : vector<32x256xf32>, vector<256x8xf32>, vector<32x8xf32> -> vector<32x8xf32>
    %6 = vector.extract_strided_slice %5 {offsets = [0, 0], sizes = [32, 1], strides = [1, 1]} : vector<32x8xf32> to vector<32x1xf32>
    %7 = arith.mulf %4, %4 : vector<32x256xf32>
    %cst_6 = arith.constant dense<0.000000e+00> : vector<32x8xf32>
    %8 = tpu.matmul %7, %2, %cst_6 {dimension_numbers = #tpu.dot_dimension_numbers<[1], [0], [0], [1], [0, 0, 1, 1], [], []>} : vector<32x256xf32>, vector<256x8xf32>, vector<32x8xf32> -> vector<32x8xf32>
    %9 = vector.extract_strided_slice %8 {offsets = [0, 0], sizes = [32, 1], strides = [1, 1]} : vector<32x8xf32> to vector<32x1xf32>
    %cst_7 = arith.constant 3.906250e-03 : f32
    %10 = vector.broadcast %cst_7 : f32 to vector<32x1xf32>
    %11 = arith.mulf %6, %10 : vector<32x1xf32>
    %cst_8 = arith.constant 3.906250e-03 : f32
    %12 = vector.broadcast %cst_8 : f32 to vector<32x1xf32>
    %13 = arith.mulf %9, %12 : vector<32x1xf32>
    %14 = arith.mulf %11, %11 : vector<32x1xf32>
    %15 = arith.subf %13, %14 : vector<32x1xf32>
    %cst_9 = arith.constant 0.000000e+00 : f32
    %16 = vector.broadcast %cst_9 : f32 to vector<32x1xf32>
    %17 = arith.maximumf %15, %16 : vector<32x1xf32>
    %cst_10 = arith.constant 9.99999974E-6 : f32
    %18 = vector.broadcast %cst_10 : f32 to vector<32x1xf32>
    %19 = arith.addf %17, %18 : vector<32x1xf32>
    %20 = math.rsqrt %19 : vector<32x1xf32>
    %cst_11 = arith.constant 0.000000e+00 : f32
    %21 = vector.broadcast %cst_11 : f32 to vector<32x1xf32>
    %22 = arith.subf %21, %11 : vector<32x1xf32>
    %23 = arith.mulf %22, %20 : vector<32x1xf32>
    %24 = vector.broadcast %20 : vector<32x1xf32> to vector<32x256xf32>
    %25 = arith.mulf %4, %24 : vector<32x256xf32>
    %26 = vector.broadcast %23 : vector<32x1xf32> to vector<32x256xf32>
    %27 = arith.addf %25, %26 : vector<32x256xf32>
    %cst_12 = arith.constant 2.000000e-01 : f32
    %28 = vector.broadcast %cst_12 : f32 to vector<32x256xf32>
    %29 = arith.mulf %28, %27 : vector<32x256xf32>
    %30 = arith.maximumf %27, %29 : vector<32x256xf32>
    %c0_13 = arith.constant 0 : index
    %c0_14 = arith.constant 0 : index
    %31 = vector.load %arg3[%c0_13, %c0_14] : memref<32x32xf32, #tpu.memory_space<vmem>>, vector<32x32xf32>
    %cst_15 = arith.constant dense<0.000000e+00> : vector<32x256xf32>
    %32 = tpu.matmul %31, %30, %cst_15 {dimension_numbers = #tpu.dot_dimension_numbers<[1], [0], [0], [1], [0, 0, 1, 1], [], []>} : vector<32x32xf32>, vector<32x256xf32>, vector<32x256xf32> -> vector<32x256xf32>
    %cst_16 = arith.constant dense<0.000000e+00> : vector<32x8xf32>
    %33 = tpu.matmul %32, %2, %cst_16 {dimension_numbers = #tpu.dot_dimension_numbers<[1], [0], [0], [1], [0, 0, 1, 1], [], []>} : vector<32x256xf32>, vector<256x8xf32>, vector<32x8xf32> -> vector<32x8xf32>
    %34 = vector.extract_strided_slice %33 {offsets = [0, 0], sizes = [32, 1], strides = [1, 1]} : vector<32x8xf32> to vector<32x1xf32>
    %35 = arith.mulf %32, %32 : vector<32x256xf32>
    %cst_17 = arith.constant dense<0.000000e+00> : vector<32x8xf32>
    %36 = tpu.matmul %35, %2, %cst_17 {dimension_numbers = #tpu.dot_dimension_numbers<[1], [0], [0], [1], [0, 0, 1, 1], [], []>} : vector<32x256xf32>, vector<256x8xf32>, vector<32x8xf32> -> vector<32x8xf32>
    %37 = vector.extract_strided_slice %36 {offsets = [0, 0], sizes = [32, 1], strides = [1, 1]} : vector<32x8xf32> to vector<32x1xf32>
    %cst_18 = arith.constant 3.906250e-03 : f32
    %38 = vector.broadcast %cst_18 : f32 to vector<32x1xf32>
    %39 = arith.mulf %34, %38 : vector<32x1xf32>
    %cst_19 = arith.constant 3.906250e-03 : f32
    %40 = vector.broadcast %cst_19 : f32 to vector<32x1xf32>
    %41 = arith.mulf %37, %40 : vector<32x1xf32>
    %42 = arith.mulf %39, %39 : vector<32x1xf32>
    %43 = arith.subf %41, %42 : vector<32x1xf32>
    %cst_20 = arith.constant 0.000000e+00 : f32
    %44 = vector.broadcast %cst_20 : f32 to vector<32x1xf32>
    %45 = arith.maximumf %43, %44 : vector<32x1xf32>
    %cst_21 = arith.constant 9.99999974E-6 : f32
    %46 = vector.broadcast %cst_21 : f32 to vector<32x1xf32>
    %47 = arith.addf %45, %46 : vector<32x1xf32>
    %48 = math.rsqrt %47 : vector<32x1xf32>
    %cst_22 = arith.constant 0.000000e+00 : f32
    %49 = vector.broadcast %cst_22 : f32 to vector<32x1xf32>
    %50 = arith.subf %49, %39 : vector<32x1xf32>
    %51 = arith.mulf %50, %48 : vector<32x1xf32>
    %52 = vector.broadcast %48 : vector<32x1xf32> to vector<32x256xf32>
    %53 = arith.mulf %32, %52 : vector<32x256xf32>
    %54 = vector.broadcast %51 : vector<32x1xf32> to vector<32x256xf32>
    %55 = arith.addf %53, %54 : vector<32x256xf32>
    %cst_23 = arith.constant 2.000000e-01 : f32
    %56 = vector.broadcast %cst_23 : f32 to vector<32x256xf32>
    %57 = arith.mulf %56, %55 : vector<32x256xf32>
    %58 = arith.maximumf %55, %57 : vector<32x256xf32>
    %c0_24 = arith.constant 0 : index
    %c0_25 = arith.constant 0 : index
    %59 = vector.load %arg4[%c0_24, %c0_25] : memref<32x32xf32, #tpu.memory_space<vmem>>, vector<32x32xf32>
    %cst_26 = arith.constant dense<0.000000e+00> : vector<32x256xf32>
    %60 = tpu.matmul %59, %58, %cst_26 {dimension_numbers = #tpu.dot_dimension_numbers<[1], [0], [0], [1], [0, 0, 1, 1], [], []>} : vector<32x32xf32>, vector<32x256xf32>, vector<32x256xf32> -> vector<32x256xf32>
    %cst_27 = arith.constant dense<0.000000e+00> : vector<32x8xf32>
    %61 = tpu.matmul %60, %2, %cst_27 {dimension_numbers = #tpu.dot_dimension_numbers<[1], [0], [0], [1], [0, 0, 1, 1], [], []>} : vector<32x256xf32>, vector<256x8xf32>, vector<32x8xf32> -> vector<32x8xf32>
    %62 = vector.extract_strided_slice %61 {offsets = [0, 0], sizes = [32, 1], strides = [1, 1]} : vector<32x8xf32> to vector<32x1xf32>
    %63 = arith.mulf %60, %60 : vector<32x256xf32>
    %cst_28 = arith.constant dense<0.000000e+00> : vector<32x8xf32>
    %64 = tpu.matmul %63, %2, %cst_28 {dimension_numbers = #tpu.dot_dimension_numbers<[1], [0], [0], [1], [0, 0, 1, 1], [], []>} : vector<32x256xf32>, vector<256x8xf32>, vector<32x8xf32> -> vector<32x8xf32>
    %65 = vector.extract_strided_slice %64 {offsets = [0, 0], sizes = [32, 1], strides = [1, 1]} : vector<32x8xf32> to vector<32x1xf32>
    %cst_29 = arith.constant 3.906250e-03 : f32
    %66 = vector.broadcast %cst_29 : f32 to vector<32x1xf32>
    %67 = arith.mulf %62, %66 : vector<32x1xf32>
    %cst_30 = arith.constant 3.906250e-03 : f32
    %68 = vector.broadcast %cst_30 : f32 to vector<32x1xf32>
    %69 = arith.mulf %65, %68 : vector<32x1xf32>
    %70 = arith.mulf %67, %67 : vector<32x1xf32>
    %71 = arith.subf %69, %70 : vector<32x1xf32>
    %cst_31 = arith.constant 0.000000e+00 : f32
    %72 = vector.broadcast %cst_31 : f32 to vector<32x1xf32>
    %73 = arith.maximumf %71, %72 : vector<32x1xf32>
    %cst_32 = arith.constant 9.99999974E-6 : f32
    %74 = vector.broadcast %cst_32 : f32 to vector<32x1xf32>
    %75 = arith.addf %73, %74 : vector<32x1xf32>
    %76 = math.rsqrt %75 : vector<32x1xf32>
    %cst_33 = arith.constant 0.000000e+00 : f32
    %77 = vector.broadcast %cst_33 : f32 to vector<32x1xf32>
    %78 = arith.subf %77, %67 : vector<32x1xf32>
    %79 = arith.mulf %78, %76 : vector<32x1xf32>
    %80 = vector.broadcast %76 : vector<32x1xf32> to vector<32x256xf32>
    %81 = arith.mulf %60, %80 : vector<32x256xf32>
    %82 = vector.broadcast %79 : vector<32x1xf32> to vector<32x256xf32>
    %83 = arith.addf %81, %82 : vector<32x256xf32>
    %cst_34 = arith.constant 2.000000e-01 : f32
    %84 = vector.broadcast %cst_34 : f32 to vector<32x256xf32>
    %85 = arith.mulf %84, %83 : vector<32x256xf32>
    %86 = arith.maximumf %83, %85 : vector<32x256xf32>
    %c0_35 = arith.constant 0 : index
    %c0_36 = arith.constant 0 : index
    %87 = vector.load %arg5[%c0_35, %c0_36] : memref<32x32xf32, #tpu.memory_space<vmem>>, vector<32x32xf32>
    %cst_37 = arith.constant dense<0.000000e+00> : vector<32x256xf32>
    %88 = tpu.matmul %87, %86, %cst_37 {dimension_numbers = #tpu.dot_dimension_numbers<[1], [0], [0], [1], [0, 0, 1, 1], [], []>} : vector<32x32xf32>, vector<32x256xf32>, vector<32x256xf32> -> vector<32x256xf32>
    %cst_38 = arith.constant dense<0.000000e+00> : vector<32x8xf32>
    %89 = tpu.matmul %88, %2, %cst_38 {dimension_numbers = #tpu.dot_dimension_numbers<[1], [0], [0], [1], [0, 0, 1, 1], [], []>} : vector<32x256xf32>, vector<256x8xf32>, vector<32x8xf32> -> vector<32x8xf32>
    %90 = vector.extract_strided_slice %89 {offsets = [0, 0], sizes = [32, 1], strides = [1, 1]} : vector<32x8xf32> to vector<32x1xf32>
    %91 = arith.mulf %88, %88 : vector<32x256xf32>
    %cst_39 = arith.constant dense<0.000000e+00> : vector<32x8xf32>
    %92 = tpu.matmul %91, %2, %cst_39 {dimension_numbers = #tpu.dot_dimension_numbers<[1], [0], [0], [1], [0, 0, 1, 1], [], []>} : vector<32x256xf32>, vector<256x8xf32>, vector<32x8xf32> -> vector<32x8xf32>
    %93 = vector.extract_strided_slice %92 {offsets = [0, 0], sizes = [32, 1], strides = [1, 1]} : vector<32x8xf32> to vector<32x1xf32>
    %cst_40 = arith.constant 3.906250e-03 : f32
    %94 = vector.broadcast %cst_40 : f32 to vector<32x1xf32>
    %95 = arith.mulf %90, %94 : vector<32x1xf32>
    %cst_41 = arith.constant 3.906250e-03 : f32
    %96 = vector.broadcast %cst_41 : f32 to vector<32x1xf32>
    %97 = arith.mulf %93, %96 : vector<32x1xf32>
    %98 = arith.mulf %95, %95 : vector<32x1xf32>
    %99 = arith.subf %97, %98 : vector<32x1xf32>
    %cst_42 = arith.constant 0.000000e+00 : f32
    %100 = vector.broadcast %cst_42 : f32 to vector<32x1xf32>
    %101 = arith.maximumf %99, %100 : vector<32x1xf32>
    %cst_43 = arith.constant 9.99999974E-6 : f32
    %102 = vector.broadcast %cst_43 : f32 to vector<32x1xf32>
    %103 = arith.addf %101, %102 : vector<32x1xf32>
    %104 = math.rsqrt %103 : vector<32x1xf32>
    %cst_44 = arith.constant 0.000000e+00 : f32
    %105 = vector.broadcast %cst_44 : f32 to vector<32x1xf32>
    %106 = arith.subf %105, %95 : vector<32x1xf32>
    %107 = arith.mulf %106, %104 : vector<32x1xf32>
    %108 = vector.broadcast %104 : vector<32x1xf32> to vector<32x256xf32>
    %109 = arith.mulf %88, %108 : vector<32x256xf32>
    %110 = vector.broadcast %107 : vector<32x1xf32> to vector<32x256xf32>
    %111 = arith.addf %109, %110 : vector<32x256xf32>
    %cst_45 = arith.constant 2.000000e-01 : f32
    %112 = vector.broadcast %cst_45 : f32 to vector<32x256xf32>
    %113 = arith.mulf %112, %111 : vector<32x256xf32>
    %114 = arith.maximumf %111, %113 : vector<32x256xf32>
    %c0_46 = arith.constant 0 : index
    %c0_47 = arith.constant 0 : index
    %115 = vector.load %arg6[%c0_46, %c0_47] : memref<4x32xf32, #tpu.memory_space<vmem>>, vector<4x32xf32>
    %cst_48 = arith.constant dense<0.000000e+00> : vector<4x256xf32>
    %116 = tpu.matmul %115, %114, %cst_48 {dimension_numbers = #tpu.dot_dimension_numbers<[1], [0], [0], [1], [0, 0, 1, 1], [], []>} : vector<4x32xf32>, vector<32x256xf32>, vector<4x256xf32> -> vector<4x256xf32>
    %117 = arith.negf %116 : vector<4x256xf32>
    %118 = math.exp %117 : vector<4x256xf32>
    %cst_49 = arith.constant 1.000000e+00 : f32
    %119 = vector.broadcast %cst_49 : f32 to vector<4x256xf32>
    %120 = arith.addf %119, %118 : vector<4x256xf32>
    %121 = arith.divf %119, %120 : vector<4x256xf32>
    %c0_50 = arith.constant 0 : index
    %c0_51 = arith.constant 0 : index
    %c0_52 = arith.constant 0 : index
    %122 = vector.load %arg7[%c0_50, %c0_51, %c0_52] : memref<1x4x256xf32, #tpu.memory_space<vmem>>, vector<1x4x256xf32>
    %123 = vector.shape_cast %122 : vector<1x4x256xf32> to vector<4x256xf32>
    %124 = vector.shape_cast %121 : vector<4x256xf32> to vector<1x4x256xf32>
    tpu.vector_store %arg7[%c0_50, %c0_51, %c0_52], %124 {strides = array<i32>} : memref<1x4x256xf32, #tpu.memory_space<vmem>>, vector<1x4x256xf32>,
    return
  }
  func.func @transform_0(%arg0: i32) -> (i32, i32, i32) {
    %c0_i32 = arith.constant 0 : i32
    %c0_i32_0 = arith.constant 0 : i32
    %c0_i32_1 = arith.constant 0 : i32
    return %arg0, %c0_i32, %c0_i32_0 : i32, i32, i32
  }
  func.func @transform_1(%arg0: i32) -> (i32, i32) {
    %c0_i32 = arith.constant 0 : i32
    %c0_i32_0 = arith.constant 0 : i32
    %c0_i32_1 = arith.constant 0 : i32
    return %c0_i32, %c0_i32_0 : i32, i32
  }
  func.func @transform_2(%arg0: i32) -> (i32, i32) {
    %c0_i32 = arith.constant 0 : i32
    %c0_i32_0 = arith.constant 0 : i32
    %c0_i32_1 = arith.constant 0 : i32
    return %c0_i32, %c0_i32_0 : i32, i32
  }
  func.func @transform_3(%arg0: i32) -> (i32, i32) {
    %c0_i32 = arith.constant 0 : i32
    %c0_i32_0 = arith.constant 0 : i32
    %c0_i32_1 = arith.constant 0 : i32
    return %c0_i32, %c0_i32_0 : i32, i32
  }
  func.func @transform_4(%arg0: i32) -> (i32, i32) {
    %c0_i32 = arith.constant 0 : i32
    %c0_i32_0 = arith.constant 0 : i32
    %c0_i32_1 = arith.constant 0 : i32
    return %c0_i32, %c0_i32_0 : i32, i32
  }
  func.func @transform_5(%arg0: i32) -> (i32, i32) {
    %c0_i32 = arith.constant 0 : i32
    %c0_i32_0 = arith.constant 0 : i32
    %c0_i32_1 = arith.constant 0 : i32
    return %c0_i32, %c0_i32_0 : i32, i32
  }
  func.func @transform_6(%arg0: i32) -> (i32, i32, i32) {
    %c0_i32 = arith.constant 0 : i32
    %c0_i32_0 = arith.constant 0 : i32
    %c0_i32_1 = arith.constant 0 : i32
    return %arg0, %c0_i32, %c0_i32_0 : i32, i32, i32
  }
}

</mosaic_0001>

<bundles_post_ra>
// kernel: tpu_custom_call.1
= control target key start
LH: loop header
LB: loop body
LE: loop exit
PB: predicated region body
PF: predicated region fallthrough
CT: control target
= control target key end

     0   :  { %s3447_s0 = inlined_call_operand.hbm [shape: f32[2,4,256], index: 0, kind: input, shape index: {}]   ;;  %s3448_s1 = inlined_call_operand.vmem [shape: f32[32,4], index: 1, kind: input, shape index: {}]   ;;  %s3449_s2 = inlined_call_operand.vmem [shape: f32[32,32], index: 2, kind: input, shape index: {}]   ;;  %s3450_s3 = inlined_call_operand.hbm [shape: f32[32,32], index: 3, kind: input, shape index: {}]   ;;  %s3451_s4 = inlined_call_operand.hbm [shape: f32[32,32], index: 4, kind: input, shape index: {}]   ;;  %s3452_s5 = inlined_call_operand.vmem [shape: f32[4,32], index: 5, kind: input, shape index: {}]   ;;  %s3453_s6 = inlined_call_operand.hbm [shape: f32[2,4,256], index: 6, kind: output, shape index: {}]  }
   0x1   :  { %3458 = sst [smem:[#allocation12_spill]] %s3450_s3 }
   0x2   :  { %11 = vsyncpa [#allocation3], 0 }
   0x3   :  { %13 = vsyncpa [#allocation3 + $0x1], 0 }
   0x4   :  { %14 = vsyncpa [#allocation6], 0 }
   0x5   :  { %15 = vsyncpa [#allocation4], 0 }
   0x6   :  { %17 = vsyncpa [#allocation4 + $0x1], 0  ;;  %s2769_s21 = smov 0   ;;  %s2771_s22 = smov 0  }
   0x7   :  { %s2773_s23 = smov 0   ;;  %s2775_s24 = smov 0  }
   0x8 LB: > { %s2790_s25 = sadd.s32 4294967295, %s2723_s24   ;;  %s2067_s26 = sadd.s32 4294967294, %s2723_s24   ;;  %s2723_s24 = sphi %s2775_s24, %s3477_s24   ;;  %s2719_s23 = sphi %s2773_s23, %s3476_s23   ;;  %s2715_s22 = sphi %s2771_s22, %s3475_s22   ;;  %s2711_s21 = sphi %s2769_s21, %s3474_s21  }
   0x9   : > { %p43_p0 = scmp.ne.s32.totalorder %s2715_s22, %s2711_s21  ;;  %p3454_p1 = scmp.eq.s32.totalorder %s2790_s25, 0 }
   0xa   : > { %p178_p3 = scmp.eq.s32.totalorder %s2067_s26, 1  ;;  %p2068_p5 = scmp.ge.s32.totalorder %s2723_s24, 1 }
   0xb   : > { %p2799_p4 = por %p3454_p1, %p43_p0  ;;  %p185_p7 = scmp.lt.s32.totalorder %s2723_s24, 3 }
   0xc   : > { %p2804_p6 = por %p178_p3, %p43_p0  ;;  %s2725_s30 = smov [#allocation5]  }
   0xd   : > { %s3459_s27 = scalar_select %p2799_p4, 1, 0 }
   0xe   : > { %s3460_s28 = scalar_select %p2804_p6, 1, 0 }
   0xf   : > { %p2809_p8 = pnand %p2068_p5, %p185_p7  ;;  %s203_s7 = sshll.u32 %s2725_s30, 4  ;;  %s204_s7 = int_to_ptr.vmem [resolvable:$true] %s203_s7 }
  0x10   : > { %s2726_s9 = smov [#allocation7]   ;;  %s2586_s11 = scalar_lea.vmem %s204_s7, 512 }
  0x11   : > { %s3461_s29 = scalar_select %p2809_p8, 1, 0 }
  0x12   : > { %p2472_p9 = pneg %p2809_p8  ;;  %s216_s10 = sshll.u32 %s2726_s9, 4  ;;  %s217_s10 = int_to_ptr.vmem [resolvable:$true] %s216_s10 }
  0x13   : > { %p2587_p13 = scmp.ne.s32.totalorder %s204_s7, %s2586_s11  ;;  %p2594_p5 = scmp.lt.s32.totalorder %s204_s7, %s204_s7 }
  0x14   : > { %p2818_p11 = pnand %p2472_p9, %p3454_p1  ;;  %p2595_p7 = scmp.lt.s32.totalorder %s2586_s11, %s2586_s11 }
  0x16   : > { %p2577_p12 = pneg %p2818_p11  ;;  %p2596_p10 = por %p2595_p7, %p2594_p5 }
  0x18   : > { %p2589_p0 = pnand %p2587_p13, %p2577_p12 }
  0x1a   : > { %p2590_p3 = pneg %p2589_p0 }
  0x1c   : > { %p2597_p9 = pnand %p2596_p10, %p2590_p3 }
  0x1e   : > { %2600 = shalt.err (!%p2597_p9)
}
  0x1f   : > { %s2727_s12 = smov 128   ;;  %s2728_s13 = smov 8  }
  0x20   : > { %s3463_s3 = sld [smem:[#allocation12_spill]]  ;;  %s2612_s16 = scalar_lea.vmem %s217_s10, 512 }
  0x21   : > { %p2613_p1 = scmp.ne.s32.totalorder %s217_s10, %s2612_s16  ;;  %p2620_p2 = scmp.lt.s32.totalorder %s217_s10, %s217_s10 }
  0x22   : > { %p2621_p6 = scmp.lt.s32.totalorder %s2612_s16, %s2612_s16 }
  0x23   : > { %p2615_p13 = pnand %p2613_p1, %p2577_p12 }
  0x24   : > { %p2622_p5 = por %p2621_p6, %p2620_p2 }
  0x25   : > { %p2616_p0 = pneg %p2615_p13 }
  0x26   : > { %2475 = dma.hbm_to_vmem [thread:$0]  (!%p2818_p11), %s3463_s3, 512, %s204_s7, [#allocation6], %s2727_s12, %s2727_s12, %s2728_s13  }
  0x27   : > { %p2623_p10 = pnand %p2622_p5, %p2616_p0 }
  0x29   : > { %2626 = shalt.err (!%p2623_p10)
}
  0x2a   : > { %2478 = dma.hbm_to_vmem [thread:$0]  (!%p2818_p11), %s3451_s4, 512, %s217_s10, [#allocation6], %s2727_s12, %s2727_s12, %s2728_s13  }
  0x2b   : > { %s2841_s19 = sadd.s32 1, %s2723_s24   ;;  %s30_s20 = sadd.s32 1, %s2719_s23 }
  0x2c   : > { %s27_s26 = ssub.s32 %s2723_s24, %s2841_s19  ;;  %p37_p1 = scmp.ne.s32.totalorder %s2719_s23, %s2715_s22 }
  0x2d   : > { %p28_p2 = scmp.eq.s32.totalorder %s27_s26, 0  ;;  %p38_p6 = scmp.eq.s32.totalorder %s2723_s24, 0 }
  0x2e   : > { %p3464_p12 = scmp.eq.s32.totalorder %s2790_s25, 1  ;;  %p2489_p7 = scmp.lt.s32.totalorder %s2723_s24, 2 }
  0x2f   : > { %s2857_s7 = scalar_select %p28_p2, %s2719_s23, %s30_s20  }
  0x30   : > { %p2851_p3 = por %p3464_p12, %p37_p1  ;;  %p39_p9 = por %p38_p6, %p37_p1 }
  0x31   : > { %s233_s8 = sand.u32 1, %s2719_s23   ;;  %s2106_s10 = sshll.u32 %s2723_s24, 7 }
  0x32   : > { %s3465_s30 = scalar_select %p2851_p3, 1, 0 }
  0x33   : > { %s2072_s9 = sshll.u32 %s233_s8, 3  ;;  %s2864_s13 = scalar_lea.hbm %s3447_s0, %s2106_s10 }
  0x34   : > { %s237_s14 = scalar_lea.vmem [#allocation2], %s2072_s9  ;;  %p2866_p11 = pnand %p2489_p7, %p39_p9 }
  0x35   : > { %s245_s15 = sshll.u32 %s237_s14, 4  ;;  %s234_s17 = scalar_lea.sflag [#allocation3], %s233_s8  ;;  %s246_s15 = int_to_ptr.vmem [resolvable:$true] %s245_s15 }
  0x36   : > { %s2627_s18 = scalar_lea.hbm %s2864_s13, 128  ;;  %p2629_p0 = pneg %p2866_p11 }
  0x37   : > { %p2628_p13 = scmp.ne.s32.totalorder %s2864_s13, %s2627_s18  ;;  %s2632_s10 = scalar_lea.hbm %s3447_s0, 256 }
  0x38   : > { %p2633_p1 = scmp.lt.s32.totalorder %s2864_s13, %s3447_s0  ;;  %p2634_p2 = scmp.lt.s32.totalorder %s2632_s10, %s2627_s18 }
  0x39   : > { %p2630_p5 = pnand %p2629_p0, %p2628_p13 }
  0x3a   : > { %p2635_p6 = por %p2634_p2, %p2633_p1 }
  0x3b   : > { %p2631_p10 = pneg %p2630_p5 }
  0x3d   : > { %p2636_p12 = pnand %p2635_p6, %p2631_p10 }
  0x3f   : > { %2639 = shalt.err (!%p2636_p12)
}
  0x40   : > { %s2640_s12 = scalar_lea.vmem %s246_s15, 128  ;;  %s2729_s8 = smov [#allocation2]  }
  0x41   : > { %p2641_p7 = scmp.ne.s32.totalorder %s246_s15, %s2640_s12  ;;  %s2645_s14 = sshll.u32 %s2729_s8, 4  ;;  %s2646_s14 = int_to_ptr.vmem [resolvable:$false] %s2645_s14 }
  0x42   : > { %s2647_s3 = scalar_lea.vmem %s2646_s14, 256  ;;  %p2648_p13 = scmp.lt.s32.totalorder %s246_s15, %s2646_s14 }
  0x43   : > { %p2643_p9 = pnand %p2641_p7, %p2629_p0  ;;  %p2649_p5 = scmp.lt.s32.totalorder %s2647_s3, %s2640_s12 }
  0x45   : > { %p2644_p3 = pneg %p2643_p9  ;;  %p2650_p4 = por %p2649_p5, %p2648_p13 }
  0x47   : > { %p2651_p8 = pnand %p2650_p4, %p2644_p3 }
  0x49   : > { %2654 = shalt.err (!%p2651_p8)
}
  0x4a   : > { %2482 = dma.hbm_to_vmem [thread:$0]  (!%p2866_p11), %s2864_s13, 128, %s246_s15, %s234_s17  }
  0x4b   : > { %p3467_p10 = scmp.ne.s32.totalorder %s3461_s29, 0 }
  0x4c   : > { %s2887_s18 = sand.u32 (!%p3467_p10), 1, %s2715_s22   ;;  %p3468_p4 = scmp.ne.s32.totalorder (!%p3467_p10), %s3459_s27, 0 }
  0x4d   : > { %254 = sbr.rel (%p3467_p10) target bundleno = 2627 (0xa43), region = 44  ;;  %s2076_s20 = sshll.u32 (!%p3467_p10), %s2887_s18, 3 }
  0x4e   : > { %s257_s26 = scalar_lea.sflag (!%p3467_p10), [#allocation3], %s2887_s18  ;;  %s260_s3 = scalar_lea.vmem (!%p3467_p10), [#allocation2], %s2076_s20 }
  0x52   : > { %2698 = dma.done.wait (%p3468_p4), %s257_s26, 128  }
  0x53   : > { %2700 = vsyncadd (%p3468_p4), %s257_s26, 4294967168  ;;  %p3469_p8 = scmp.eq.s32.totalorder %s2790_s25, 0 }
  0x55   : > { %2702 = dma.done.wait (%p3469_p8), [#allocation6], 1024   ;;  %p3470_p3 = pmov %p3469_p8 }
  0x56   : > { %v2730_v0 = vmov 0.0   ;;  %v2731_v1 = vmov 1.0   ;;  %v297_v2 = vld [vmem:[%s260_s3] sm:$0xff]  ;;  %vm317_vm0 = vcmask 1043456   ;;  %vm304_vm1 = vcmask 31744   ;;  %v300_v6 = vld [vmem:[%s3448_s1 + $0x10] sm:$0xff] }
  0x57   : > { %2704 = vsyncadd (%p3470_p3), [#allocation6], 4294966272  ;;  %386 = vmatprep.mubr.f32.mxu0 %v2730_v0  ;;  %2108 = vmatprep.subr.mxu1 %v2731_v1  ;;  %v303_v3 = vcombine.high %v297_v2, %v297_v2  ;;  %v298_v4 = vld [vmem:[%s3448_s1] sm:$0xff]  ;;  %v299_v5 = vld [vmem:[%s3448_s1 + $0x8] sm:$0xff]  ;;  %v2732_v24 = vmov 0   ;;  %vm701_vm2 = vcmask 261120  }
  0x58   : > { %2109 = vmatpush3.msra.mxu1 %v2731_v1  ;;  %v301_v7 = vld [vmem:[%s3448_s1 + $0x18] sm:$0xff]  ;;  %2532 = vset.pattern.permute.xlu1 %v2732_v24  ;;  %s2107_s16 = sshll.u32 %s2790_s25, 7  ;;  %s296_s17 = scalar_lea.vmem [#allocation8], %s2076_s20 }
  0x59   : > { %2110 = vmatprep.subr.mxu1 %v2731_v1  ;;  %2080 = vmatprep.subr.msk.mxu0 %vm317_vm0, %v303_v3  ;;  %s1978_s10 = sshll.u32 %s296_s17, 4  ;;  %s1976_s12 = scalar_lea.hbm %s3453_s6, %s2107_s16  ;;  %s1979_s10 = int_to_ptr.vmem [resolvable:$true] %s1978_s10 }
  0x5a   : > { %2111 = vmatpush3.msra.mxu1 %v2731_v1  ;;  %2081 = vmatpush1.msk.msra.mxu0 %vm317_vm0, %v297_v2  ;;  %s1964_s8 = scalar_lea.sflag [#allocation4], %s2887_s18  ;;  %s2655_s14 = scalar_lea.vmem %s1979_s10, 128 }
  0x5b   : > { %2112 = vmatprep.subr.mxu1 %v2731_v1  ;;  %2082 = vmatmul.mubr.msk.f32.vlgmr.msra.gmra.mxu0 %vm304_vm1, %v298_v4  ;;  %p2656_p11 = scmp.ne.s32.totalorder %s1979_s10, %s2655_s14  ;;  %p3471_p0 = scmp.ne.s32.totalorder %s3465_s30, 0 }
  0x5c   : > { %2113 = vmatpush3.msra.mxu1 %v2731_v1  ;;  %2152 = vmatprep.subr.mxu0 %v2731_v1  ;;  %s2733_s26 = smov [#allocation8]  }
  0x5d   : > { %2114 = vmatprep.subr.mxu1 %v2731_v1  ;;  %392 = vmatprep.mubr.f32.mxu0 %v2730_v0  ;;  %p2657_p1 = pnand %p2656_p11, %p3471_p0  ;;  %s2659_s25 = sshll.u32 %s2733_s26, 4  ;;  %s2660_s25 = int_to_ptr.vmem [resolvable:$false] %s2659_s25 }
  0x5e   : > { %2115 = vmatpush3.msra.mxu1 %v2731_v1  ;;  %2153 = vmatpush3.msra.mxu0 %v2731_v1  ;;  %s2661_s20 = scalar_lea.vmem %s2660_s25, 256  ;;  %p2662_p6 = scmp.lt.s32.totalorder %s1979_s10, %s2660_s25 }
  0x5f   : > { %2116 = vmatprep.subr.mxu1 %v2731_v1  ;;  %2154 = vmatprep.subr.mxu0 %v2731_v1  ;;  %p2658_p2 = pneg %p2657_p1  ;;  %p2663_p12 = scmp.lt.s32.totalorder %s2661_s20, %s2655_s14 }
  0x60   : > { %2117 = vmatpush3.msra.mxu1 %v2731_v1  ;;  %2155 = vmatpush3.msra.mxu0 %v2731_v1 }
  0x61   : > { %2118 = vmatprep.subr.mxu1 %v2731_v1  ;;  %2083 = vmatmul.mubr.msk.f32.gmra.mxu0 %vm304_vm1, %v299_v5  ;;  %p2664_p7 = por %p2663_p12, %p2662_p6 }
  0x62   : > { %2119 = vmatpush3.msra.mxu1 %v2731_v1  ;;  %2156 = vmatprep.subr.mxu0 %v2731_v1 }
  0x63   : > { %2120 = vmatprep.subr.mxu1 %v2731_v1  ;;  %398 = vmatprep.mubr.f32.mxu0 %v2730_v0  ;;  %p2665_p9 = pnand %p2664_p7, %p2658_p2 }
  0x64   : > { %2157 = vmatpush3.msra.mxu0 %v2731_v1  ;;  %2121 = vmatpush3.msra.mxu1 %v2731_v1 }
  0x65   : > { %2158 = vmatprep.subr.mxu0 %v2731_v1  ;;  %2122 = vmatprep.subr.mxu1 %v2731_v1 }
  0x66   : > { %2159 = vmatpush3.msra.mxu0 %v2731_v1  ;;  %2123 = vmatpush3.msra.mxu1 %v2731_v1 }
  0x67   : > { %2084 = vmatmul.mubr.msk.f32.gmra.mxu0 %vm304_vm1, %v300_v6  ;;  %2160 = vmatprep.subr.mxu0 %v2731_v1 }
  0x68   : > { %404 = vmatprep.mubr.f32.mxu0 %v2730_v0  ;;  %2161 = vmatpush3.msra.mxu0 %v2731_v1 }
  0x69   : > { %2162 = vmatprep.subr.mxu0 %v2731_v1  ;;  %2124 = vmatprep.subr.mxu1 %v2731_v1 }
  0x6a   : > { %2163 = vmatpush3.msra.mxu0 %v2731_v1  ;;  %2125 = vmatpush3.msra.mxu1 %v2731_v1 }
  0x6b   : > { %2085 = vmatmul.mubr.msk.f32.gmra.mxu0 %vm304_vm1, %v301_v7  ;;  %2164 = vmatprep.subr.mxu0 %v2731_v1 }
  0x6c   : > { %2165 = vmatpush3.msra.mxu0 %v2731_v1  ;;  %2126 = vmatprep.subr.mxu1 %v2731_v1 }
  0x6d   : > { %2166 = vmatprep.subr.mxu0 %v2731_v1  ;;  %2127 = vmatpush3.msra.mxu1 %v2731_v1 }
  0x6e   : > { %2167 = vmatpush3.msra.mxu0 %v2731_v1  ;;  %2128 = vmatprep.subr.mxu1 %v2731_v1 }
  0x6f   : > { %2168 = vmatprep.subr.mxu0 %v2731_v1  ;;  %2129 = vmatpush3.msra.mxu1 %v2731_v1 }
  0x70   : > { %2169 = vmatpush3.msra.mxu0 %v2731_v1  ;;  %2130 = vmatprep.subr.mxu1 %v2731_v1 }
  0x71   : > { %2170 = vmatprep.subr.mxu0 %v2731_v1  ;;  %2131 = vmatpush3.msra.mxu1 %v2731_v1 }
  0x72   : > { %2171 = vmatpush3.msra.mxu0 %v2731_v1  ;;  %2132 = vmatprep.subr.mxu1 %v2731_v1 }
  0x73   : > { %2172 = vmatprep.subr.mxu0 %v2731_v1  ;;  %2133 = vmatpush3.msra.mxu1 %v2731_v1 }
  0x74   : > { %2173 = vmatpush3.msra.mxu0 %v2731_v1  ;;  %2134 = vmatprep.subr.mxu1 %v2731_v1 }
  0x75   : > { %2174 = vmatprep.subr.mxu0 %v2731_v1  ;;  %2135 = vmatpush3.msra.mxu1 %v2731_v1 }
  0x76   : > { %2175 = vmatpush3.msra.mxu0 %v2731_v1  ;;  %2136 = vmatprep.subr.mxu1 %v2731_v1 }
  0x77   : > { %2176 = vmatprep.subr.mxu0 %v2731_v1  ;;  %2137 = vmatpush3.msra.mxu1 %v2731_v1 }
  0x78   : > { %2177 = vmatpush3.msra.mxu0 %v2731_v1  ;;  %2138 = vmatprep.subr.mxu1 %v2731_v1 }
  0x79   : > { %2178 = vmatprep.subr.mxu0 %v2731_v1  ;;  %2139 = vmatpush3.msra.mxu1 %v2731_v1 }
  0x7a   : > { %2179 = vmatpush3.msra.mxu0 %v2731_v1  ;;  %2533 = vset.pattern.permute.xlu0 %v2732_v24 }
  0x7b   : > { %2180 = vmatprep.subr.mxu0 %v2731_v1 }
  0x7c   : > { %2181 = vmatpush3.msra.mxu0 %v2731_v1 }
  0x7d   : > { %2182 = vmatprep.subr.mxu0 %v2731_v1 }
  0x7e   : > { %2183 = vmatpush3.msra.mxu0 %v2731_v1 }
  0x7f   : > { %2196 = vmatprep.subr.mxu0 %v2731_v1 }
 0x11b   : > { %v2986_v8 = vpop.f32.mrf.mxu0 }
 0x11c   : > { %v496_v11 = vmul.f32 %v2986_v8, %v2986_v8 }
 0x11d   : > { %v2988_v9 = vpop.f32.mrf.mxu0 }
 0x11e   : > { %v497_v10 = vmul.f32 %v2988_v9, %v2988_v9  ;;  %475 = vmatprep.mubr.f32.mxu1 %v2988_v9 }
 0x11f   : > { %476 = vmatmul.mubr.f32.vlgmr.msra.gmra.mxu1 %v2986_v8 }
 0x120   : > { %568 = vmatprep.mubr.f32.mxu0 %v497_v10 }
 0x121   : > { %v2995_v12 = vpop.f32.mrf.mxu0  ;;  %569 = vmatmul.mubr.f32.vlgmr.msra.gmra.mxu0 %v496_v11 }
 0x122   : > { %2197 = vmatpush3.msra.mxu0 %v2731_v1  ;;  %v498_v15 = vmul.f32 %v2995_v12, %v2995_v12 }
 0x123   : > { %v2998_v13 = vpop.f32.mrf.mxu0  ;;  %2198 = vmatprep.subr.mxu0 %v2731_v1 }
 0x124   : > { %v499_v14 = vmul.f32 %v2998_v13, %v2998_v13  ;;  %480 = vmatprep.mubr.f32.mxu1 %v2998_v13  ;;  %2199 = vmatpush3.msra.mxu0 %v2731_v1 }
 0x125   : > { %481 = vmatmul.mubr.f32.gmra.mxu1 %v2995_v12  ;;  %2200 = vmatprep.subr.mxu0 %v2731_v1 }
 0x126   : > { %573 = vmatprep.mubr.f32.mxu0 %v499_v14  ;;  %2201 = vmatpush3.msra.mxu0 %v2731_v1 }
 0x127   : > { %v3006_v16 = vpop.f32.mrf.mxu0  ;;  %574 = vmatmul.mubr.f32.gmra.mxu0 %v498_v15  ;;  %2202 = vmatprep.subr.mxu0 %v2731_v1 }
 0x128   : > { %v500_v19 = vmul.f32 %v3006_v16, %v3006_v16  ;;  %2203 = vmatpush3.msra.mxu0 %v2731_v1 }
 0x129   : > { %v3011_v17 = vpop.f32.mrf.mxu0  ;;  %2204 = vmatprep.subr.mxu0 %v2731_v1 }
 0x12a   : > { %v501_v18 = vmul.f32 %v3011_v17, %v3011_v17  ;;  %485 = vmatprep.mubr.f32.mxu1 %v3011_v17  ;;  %2205 = vmatpush3.msra.mxu0 %v2731_v1 }
 0x12b   : > { %v3020_v20 = vpop.f32.mrf.mxu0  ;;  %486 = vmatmul.mubr.f32.gmra.mxu1 %v3006_v16  ;;  %2206 = vmatprep.subr.mxu0 %v2731_v1 }
 0x12c   : > { %578 = vmatprep.mubr.f32.mxu0 %v501_v18  ;;  %v502_v23 = vmul.f32 %v3020_v20, %v3020_v20  ;;  %2207 = vmatpush3.msra.mxu0 %v2731_v1 }
 0x12d   : > { %v3025_v21 = vpop.f32.mrf.mxu0  ;;  %579 = vmatmul.mubr.f32.gmra.mxu0 %v500_v19  ;;  %2208 = vmatprep.subr.mxu0 %v2731_v1 }
 0x12e   : > { %v503_v22 = vmul.f32 %v3025_v21, %v3025_v21  ;;  %490 = vmatprep.mubr.f32.mxu1 %v3025_v21  ;;  %2209 = vmatpush3.msra.mxu0 %v2731_v1 }
 0x12f   : > { %491 = vmatmul.mubr.f32.gmra.mxu1 %v3020_v20  ;;  %2210 = vmatprep.subr.mxu0 %v2731_v1 }
 0x130   : > { %583 = vmatprep.mubr.f32.mxu0 %v503_v22  ;;  %778 = vmatprep.mubr.f32.mxu1 %v2730_v0 }
 0x131   : > { %584 = vmatmul.mubr.f32.gmra.mxu0 %v502_v23 }
 0x132   : > { %2211 = vmatpush3.msra.mxu0 %v2731_v1 }
 0x133   : > { %2212 = vmatprep.subr.mxu0 %v2731_v1 }
 0x134   : > { %2213 = vmatpush3.msra.mxu0 %v2731_v1 }
 0x135   : > { %2214 = vmatprep.subr.mxu0 %v2731_v1 }
 0x136   : > { %2215 = vmatpush3.msra.mxu0 %v2731_v1 }
 0x137   : > { %2216 = vmatprep.subr.mxu0 %v2731_v1 }
 0x138   : > { %2217 = vmatpush3.msra.mxu0 %v2731_v1 }
 0x139   : > { %2218 = vmatprep.subr.mxu0 %v2731_v1 }
 0x13a   : > { %2219 = vmatpush3.msra.mxu0 %v2731_v1 }
 0x13b   : > { %2220 = vmatprep.subr.mxu0 %v2731_v1 }
 0x13c   : > { %2221 = vmatpush3.msra.mxu0 %v2731_v1 }
 0x13d   : > { %2222 = vmatprep.subr.mxu0 %v2731_v1 }
 0x13e   : > { %2223 = vmatpush3.msra.mxu0 %v2731_v1 }
 0x13f   : > { %2224 = vmatprep.subr.mxu0 %v2731_v1 }
 0x140   : > { %2225 = vmatpush3.msra.mxu0 %v2731_v1 }
 0x141   : > { %2226 = vmatprep.subr.mxu0 %v2731_v1 }
 0x142   : > { %2227 = vmatpush3.msra.mxu0 %v2731_v1 }
 0x1df   : > { %v2140_v25 = vpop.f32.mrf.mxu1 }
 0x1e1   : > { %v2141_v26 = vpop.f32.mrf.mxu1  ;;  %v2184_v27 = vpop.f32.mrf.mxu0 }
 0x1e2   : > { %v2142_v33 = vadd.f32 %v2141_v26, %v2140_v25 }
 0x1e3   : > { %v2185_v29 = vpop.f32.mrf.mxu0 }
 0x1e4   : > { %v589_v42 = vmul.f32 0.00390625, %v2142_v33  ;;  %v2186_v46 = vadd.f32 %v2185_v29, %v2184_v27 }
 0x1e5   : > { %v2143_v28 = vpop.f32.mrf.mxu1 }
 0x1e6   : > { %v597_v55 = vmul.f32 %v589_v42, %v589_v42  ;;  %v593_v58 = vmul.f32 0.00390625, %v2186_v46 }
 0x1e7   : > { %v2144_v30 = vpop.f32.mrf.mxu1  ;;  %v2187_v31 = vpop.f32.mrf.mxu0 }
 0x1e8   : > { %v2145_v32 = vadd.f32 %v2144_v30, %v2143_v28  ;;  %v601_v4 = vsub.f32 %v593_v58, %v597_v55  ;;  %v617_v28 = vsub.f32 0.0, %v589_v42 }
 0x1e9   : > { %v2188_v35 = vpop.f32.mrf.mxu0 }
 0x1ea   : > { %v590_v36 = vmul.f32 0.00390625, %v2145_v32  ;;  %v2189_v37 = vadd.f32 %v2188_v35, %v2187_v31  ;;  %v605_v10 = vmax.f32 %v601_v4, 0.0  ;;  %v700_v4 = vld [vmem:[%s3449_s2 + $0x18] sm:$0xff] }
 0x1eb   : > { %v2146_v34 = vpop.f32.mrf.mxu1 }
 0x1ec   : > { %v598_v40 = vmul.f32 %v590_v36, %v590_v36  ;;  %v594_v41 = vmul.f32 0.00390625, %v2189_v37  ;;  %v609_v14 = vadd.f32 1e-05, %v605_v10  ;;  %v618_v27 = vsub.f32 0.0, %v590_v36 }
 0x1ed   : > { %v2147_v38 = vpop.f32.mrf.mxu1  ;;  %v2190_v39 = vpop.f32.mrf.mxu0 }
 0x1ee   : > { %v2148_v43 = vadd.f32 %v2147_v38, %v2146_v34  ;;  %v602_v47 = vsub.f32 %v594_v41, %v598_v40 }
 0x1ef   : > { %v2149_v44 = vpop.f32.mrf.mxu1  ;;  %v2191_v45 = vpop.f32.mrf.mxu0 }
 0x1f0   : > { %v2192_v48 = vadd.f32 %v2191_v45, %v2190_v39  ;;  %v591_v49 = vmul.f32 0.00390625, %v2148_v43  ;;  %v606_v52 = vmax.f32 %v602_v47, 0.0 }
 0x1f1   : > { %v2150_v50 = vpop.f32.mrf.mxu1  ;;  %v2193_v51 = vpop.f32.mrf.mxu0 }
 0x1f2   : > { %v595_v53 = vmul.f32 0.00390625, %v2192_v48  ;;  %v2151_v54 = vadd.f32 %v2150_v50, %v2149_v44  ;;  %v599_v56 = vmul.f32 %v591_v49, %v591_v49  ;;  %v610_v59 = vadd.f32 1e-05, %v606_v52 }
 0x1f3   : > { %v2194_v57 = vpop.f32.mrf.mxu0  ;;  %v619_v24 = vsub.f32 0.0, %v591_v49 }
 0x1f4   : > { %v592_v60 = vmul.f32 0.00390625, %v2151_v54  ;;  %v2195_v61 = vadd.f32 %v2194_v57, %v2193_v51  ;;  %v603_v62 = vsub.f32 %v595_v53, %v599_v56  ;;  %2535 = vrsqrt.f32 %v610_v59 }
 0x1f6   : > { %v600_v63 = vmul.f32 %v592_v60, %v592_v60  ;;  %v596_v2 = vmul.f32 0.00390625, %v2195_v61  ;;  %v607_v3 = vmax.f32 %v603_v62, 0.0  ;;  %v620_v19 = vsub.f32 0.0, %v592_v60 }
 0x1f8   : > { %v604_v5 = vsub.f32 %v596_v2, %v600_v63  ;;  %v611_v6 = vadd.f32 1e-05, %v607_v3  ;;  %v697_v63 = vld [vmem:[%s3449_s2] sm:$0xff]  ;;  %v698_v2 = vld [vmem:[%s3449_s2 + $0x8] sm:$0xff]  ;;  %v699_v3 = vld [vmem:[%s3449_s2 + $0x10] sm:$0xff] }
 0x1fa   : > { %v608_v7 = vmax.f32 %v604_v5, 0.0  ;;  %2537 = vrsqrt.f32 %v611_v6 }
 0x1fc   : > { %v612_v11 = vadd.f32 1e-05, %v608_v7 }
 0x1fe   : > { %2539 = vrsqrt.f32 %v612_v11 }
 0x1ff   : > { %2541 = vrsqrt.f32 %v609_v14 }
 0x201   : > { %v2536_v15 = vpop.eup %2535 }
 0x202   : > { %632 = vperm.xlu1 %2532, %v2536_v15   ;;  %v622_v29 = vmul.f32 %v2536_v15, %v618_v27 }
 0x207   : > { %v2538_v18 = vpop.eup %2537 }
 0x208   : > { %637 = vperm.xlu0 %2533, %v2538_v18   ;;  %v623_v25 = vmul.f32 %v2538_v18, %v619_v24 }
 0x20b   : > { %v2540_v22 = vpop.eup %2539 }
 0x20c   : > { %v624_v23 = vmul.f32 %v2540_v22, %v620_v19  ;;  %642 = vperm.xlu0 %2533, %v2540_v22   ;;  %v2542_v26 = vpop.eup %2541 }
 0x20d   : > { %v621_v30 = vmul.f32 %v2542_v26, %v617_v28 }
 0x20e   : > { %670 = vperm.xlu1 %2532, %v624_v23  }
 0x210   : > { %665 = vperm.xlu0 %2533, %v623_v25  }
 0x212   : > { %627 = vperm.xlu1 %2532, %v2542_v26  }
 0x214   : > { %660 = vperm.xlu0 %2533, %v622_v29  }
 0x216   : > { %655 = vperm.xlu1 %2532, %v621_v30  }
 0x27d   : > { %v633_v32 = vpop.permute.xlu1 %632 }
 0x27e   : > { %v647_v47 = vmul.f32 %v633_v32, %v2995_v12  ;;  %v648_v48 = vmul.f32 %v633_v32, %v2998_v13 }
 0x283   : > { %v638_v31 = vpop.permute.xlu0 %637 }
 0x284   : > { %v649_v38 = vmul.f32 %v638_v31, %v3006_v16  ;;  %v650_v39 = vmul.f32 %v638_v31, %v3011_v17 }
 0x287   : > { %v643_v33 = vpop.permute.xlu0 %642 }
 0x288   : > { %v651_v34 = vmul.f32 %v643_v33, %v3020_v20  ;;  %v652_v35 = vmul.f32 %v643_v33, %v3025_v21 }
 0x289   : > { %v671_v37 = vpop.permute.xlu1 %670 }
 0x28a   : > { %v679_v36 = vadd.f32 %v671_v37, %v651_v34  ;;  %v680_v40 = vadd.f32 %v671_v37, %v652_v35 }
 0x28b   : > { %v666_v41 = vpop.permute.xlu0 %665 }
 0x28c   : > { %v687_v42 = vmul.f32 0.2, %v679_v36  ;;  %v688_v43 = vmul.f32 0.2, %v680_v40  ;;  %v677_v44 = vadd.f32 %v666_v41, %v649_v38  ;;  %v678_v45 = vadd.f32 %v666_v41, %v650_v39 }
 0x28d   : > { %v628_v46 = vpop.permute.xlu1 %627 }
 0x28e   : > { %v695_v20 = vmax.f32 %v679_v36, %v687_v42  ;;  %v696_v49 = vmax.f32 %v680_v40, %v688_v43  ;;  %v685_v21 = vmul.f32 0.2, %v677_v44  ;;  %v686_v50 = vmul.f32 0.2, %v678_v45 }
 0x28f   : > { %v645_v16 = vmul.f32 %v628_v46, %v2986_v8  ;;  %v646_v17 = vmul.f32 %v628_v46, %v2988_v9  ;;  %v661_v51 = vpop.permute.xlu0 %660 }
 0x290   : > { %v693_v52 = vmax.f32 %v677_v44, %v685_v21  ;;  %v694_v53 = vmax.f32 %v678_v45, %v686_v50  ;;  %v675_v54 = vadd.f32 %v661_v51, %v647_v47  ;;  %v676_v55 = vadd.f32 %v661_v51, %v648_v48  ;;  %738 = vmatprep.subr.mxu1 %v696_v49 }
 0x291   : > { %v656_v56 = vpop.permute.xlu1 %655  ;;  %739 = vmatpush1.msra.mxu1 %v695_v20 }
 0x292   : > { %v673_v57 = vadd.f32 %v656_v56, %v645_v16  ;;  %v674_v12 = vadd.f32 %v656_v56, %v646_v17  ;;  %v683_v58 = vmul.f32 0.2, %v675_v54  ;;  %v684_v13 = vmul.f32 0.2, %v676_v55  ;;  %740 = vmatprep.subr.mxu1 %v694_v53 }
 0x293   : > { %741 = vmatpush1.msra.mxu1 %v693_v52 }
 0x294   : > { %v681_v59 = vmul.f32 0.2, %v673_v57  ;;  %v682_v60 = vmul.f32 0.2, %v674_v12  ;;  %v691_v61 = vmax.f32 %v675_v54, %v683_v58  ;;  %v692_v8 = vmax.f32 %v676_v55, %v684_v13 }
 0x296   : > { %v689_v62 = vmax.f32 %v673_v57, %v681_v59  ;;  %v690_v9 = vmax.f32 %v674_v12, %v682_v60  ;;  %742 = vmatprep.subr.mxu1 %v692_v8 }
 0x297   : > { %743 = vmatpush1.msra.mxu1 %v691_v61 }
 0x298   : > { %744 = vmatprep.subr.mxu1 %v690_v9 }
 0x299   : > { %745 = vmatpush1.msra.mxu1 %v689_v62 }
 0x29a   : > { %2086 = vmatmul.mubr.msk.f32.vlgmr.msra.gmra.mxu1 %vm701_vm2, %v697_v63  ;;  %2240 = vmatprep.subr.mxu1 %v2731_v1 }
 0x29b   : > { %784 = vmatprep.mubr.f32.mxu1 %v2730_v0  ;;  %2241 = vmatpush3.msra.mxu1 %v2731_v1 }
 0x29c   : > { %2242 = vmatprep.subr.mxu1 %v2731_v1 }
 0x29d   : > { %2243 = vmatpush3.msra.mxu1 %v2731_v1 }
 0x29e   : > { %2087 = vmatmul.mubr.msk.f32.gmra.mxu1 %vm701_vm2, %v698_v2  ;;  %2244 = vmatprep.subr.mxu1 %v2731_v1 }
 0x29f   : > { %790 = vmatprep.mubr.f32.mxu1 %v2730_v0  ;;  %2245 = vmatpush3.msra.mxu1 %v2731_v1 }
 0x2a0   : > { %2246 = vmatprep.subr.mxu1 %v2731_v1 }
 0x2a1   : > { %2247 = vmatpush3.msra.mxu1 %v2731_v1 }
 0x2a2   : > { %2088 = vmatmul.mubr.msk.f32.gmra.mxu1 %vm701_vm2, %v699_v3  ;;  %2248 = vmatprep.subr.mxu1 %v2731_v1 }
 0x2a3   : > { %796 = vmatprep.mubr.f32.mxu1 %v2730_v0  ;;  %2249 = vmatpush3.msra.mxu1 %v2731_v1 }
 0x2a4   : > { %2250 = vmatprep.subr.mxu1 %v2731_v1 }
 0x2a5   : > { %2251 = vmatpush3.msra.mxu1 %v2731_v1 }
 0x2a6   : > { %2089 = vmatmul.mubr.msk.f32.gmra.mxu1 %vm701_vm2, %v700_v4  ;;  %2252 = vmatprep.subr.mxu1 %v2731_v1 }
 0x2a7   : > { %2253 = vmatpush3.msra.mxu1 %v2731_v1 }
 0x2a8   : > { %2254 = vmatprep.subr.mxu1 %v2731_v1 }
 0x2a9   : > { %2255 = vmatpush3.msra.mxu1 %v2731_v1 }
 0x2aa   : > { %2256 = vmatprep.subr.mxu1 %v2731_v1 }
 0x2ab   : > { %2257 = vmatpush3.msra.mxu1 %v2731_v1 }
 0x2ac   : > { %2258 = vmatprep.subr.mxu1 %v2731_v1 }
 0x2ad   : > { %2259 = vmatpush3.msra.mxu1 %v2731_v1 }
 0x2ae   : > { %2260 = vmatprep.subr.mxu1 %v2731_v1 }
 0x2af   : > { %2261 = vmatpush3.msra.mxu1 %v2731_v1 }
 0x2b0   : > { %2262 = vmatprep.subr.mxu1 %v2731_v1 }
 0x2b1   : > { %2263 = vmatpush3.msra.mxu1 %v2731_v1 }
 0x2b2   : > { %2264 = vmatprep.subr.mxu1 %v2731_v1 }
 0x2b3   : > { %2265 = vmatpush3.msra.mxu1 %v2731_v1 }
 0x2b4   : > { %2266 = vmatprep.subr.mxu1 %v2731_v1 }
 0x2b5   : > { %2267 = vmatpush3.msra.mxu1 %v2731_v1 }
 0x2b6   : > { %2268 = vmatprep.subr.mxu1 %v2731_v1 }
 0x2b7   : > { %2269 = vmatpush3.msra.mxu1 %v2731_v1 }
 0x2b8   : > { %2270 = vmatprep.subr.mxu1 %v2731_v1 }
 0x2b9   : > { %2271 = vmatpush3.msra.mxu1 %v2731_v1 }
 0x2ba   : > { %2284 = vmatprep.subr.mxu1 %v2731_v1 }
 0x35a   : > { %v3118_v5 = vpop.f32.mrf.mxu1 }
 0x35b   : > { %v888_v10 = vmul.f32 %v3118_v5, %v3118_v5 }
 0x35c   : > { %v3120_v6 = vpop.f32.mrf.mxu1 }
 0x35d   : > { %v889_v7 = vmul.f32 %v3120_v6, %v3120_v6  ;;  %867 = vmatprep.mubr.f32.mxu0 %v3120_v6 }
 0x35e   : > { %v3127_v11 = vpop.f32.mrf.mxu1  ;;  %868 = vmatmul.mubr.f32.vlgmr.msra.gmra.mxu0 %v3118_v5 }
 0x35f   : > { %960 = vmatprep.mubr.f32.mxu1 %v889_v7  ;;  %v890_v18 = vmul.f32 %v3127_v11, %v3127_v11 }
 0x360   : > { %v3130_v14 = vpop.f32.mrf.mxu1  ;;  %961 = vmatmul.mubr.f32.vlgmr.msra.gmra.mxu1 %v888_v10 }
 0x361   : > { %v891_v15 = vmul.f32 %v3130_v14, %v3130_v14  ;;  %872 = vmatprep.mubr.f32.mxu0 %v3130_v14  ;;  %2285 = vmatpush3.msra.mxu1 %v2731_v1 }
 0x362   : > { %v3138_v19 = vpop.f32.mrf.mxu1  ;;  %873 = vmatmul.mubr.f32.gmra.mxu0 %v3127_v11  ;;  %2286 = vmatprep.subr.mxu1 %v2731_v1 }
 0x363   : > { %965 = vmatprep.mubr.f32.mxu1 %v891_v15  ;;  %2287 = vmatpush3.msra.mxu1 %v2731_v1  ;;  %v892_v24 = vmul.f32 %v3138_v19, %v3138_v19 }
 0x364   : > { %v3143_v22 = vpop.f32.mrf.mxu1  ;;  %966 = vmatmul.mubr.f32.gmra.mxu1 %v890_v18  ;;  %2288 = vmatprep.subr.mxu1 %v2731_v1 }
 0x365   : > { %v893_v23 = vmul.f32 %v3143_v22, %v3143_v22  ;;  %877 = vmatprep.mubr.f32.mxu0 %v3143_v22  ;;  %2289 = vmatpush3.msra.mxu1 %v2731_v1 }
 0x366   : > { %v3152_v25 = vpop.f32.mrf.mxu1  ;;  %878 = vmatmul.mubr.f32.gmra.mxu0 %v3138_v19  ;;  %2290 = vmatprep.subr.mxu1 %v2731_v1 }
 0x367   : > { %970 = vmatprep.mubr.f32.mxu1 %v893_v23  ;;  %2291 = vmatpush3.msra.mxu1 %v2731_v1  ;;  %v894_v26 = vmul.f32 %v3152_v25, %v3152_v25 }
 0x368   : > { %v3159_v27 = vpop.f32.mrf.mxu1  ;;  %971 = vmatmul.mubr.f32.gmra.mxu1 %v892_v24  ;;  %2292 = vmatprep.subr.mxu1 %v2731_v1 }
 0x369   : > { %v895_v28 = vmul.f32 %v3159_v27, %v3159_v27  ;;  %882 = vmatprep.mubr.f32.mxu0 %v3159_v27  ;;  %2293 = vmatpush3.msra.mxu1 %v2731_v1 }
 0x36a   : > { %883 = vmatmul.mubr.f32.gmra.mxu0 %v3152_v25  ;;  %2294 = vmatprep.subr.mxu1 %v2731_v1 }
 0x36b   : > { %975 = vmatprep.mubr.f32.mxu1 %v895_v28  ;;  %1169 = vmatprep.mubr.f32.mxu0 %v2730_v0 }
 0x36c   : > { %976 = vmatmul.mubr.f32.gmra.mxu1 %v894_v26 }
 0x36d   : > { %2295 = vmatpush3.msra.mxu1 %v2731_v1 }
 0x36e   : > { %2296 = vmatprep.subr.mxu1 %v2731_v1 }
 0x36f   : > { %2297 = vmatpush3.msra.mxu1 %v2731_v1 }
 0x370   : > { %2298 = vmatprep.subr.mxu1 %v2731_v1 }
 0x371   : > { %2299 = vmatpush3.msra.mxu1 %v2731_v1 }
 0x372   : > { %2300 = vmatprep.subr.mxu1 %v2731_v1 }
 0x373   : > { %2301 = vmatpush3.msra.mxu1 %v2731_v1 }
 0x374   : > { %2302 = vmatprep.subr.mxu1 %v2731_v1 }
 0x375   : > { %2303 = vmatpush3.msra.mxu1 %v2731_v1 }
 0x376   : > { %2304 = vmatprep.subr.mxu1 %v2731_v1 }
 0x377   : > { %2305 = vmatpush3.msra.mxu1 %v2731_v1 }
 0x378   : > { %2306 = vmatprep.subr.mxu1 %v2731_v1 }
 0x379   : > { %2307 = vmatpush3.msra.mxu1 %v2731_v1 }
 0x37a   : > { %2308 = vmatprep.subr.mxu1 %v2731_v1 }
 0x37b   : > { %2309 = vmatpush3.msra.mxu1 %v2731_v1 }
 0x37c   : > { %2310 = vmatprep.subr.mxu1 %v2731_v1 }
 0x37d   : > { %2311 = vmatpush3.msra.mxu1 %v2731_v1 }
 0x37e   : > { %2312 = vmatprep.subr.mxu1 %v2731_v1 }
 0x37f   : > { %2313 = vmatpush3.msra.mxu1 %v2731_v1 }
 0x380   : > { %2314 = vmatprep.subr.mxu1 %v2731_v1 }
 0x381   : > { %2315 = vmatpush3.msra.mxu1 %v2731_v1 }
 0x41e   : > { %v2228_v29 = vpop.f32.mrf.mxu0 }
 0x420   : > { %v2229_v30 = vpop.f32.mrf.mxu0  ;;  %v2272_v31 = vpop.f32.mrf.mxu1 }
 0x421   : > { %v2230_v32 = vadd.f32 %v2229_v30, %v2228_v29 }
 0x422   : > { %v2231_v33 = vpop.f32.mrf.mxu0  ;;  %v2273_v34 = vpop.f32.mrf.mxu1 }
 0x423   : > { %v981_v39 = vmul.f32 0.00390625, %v2230_v32  ;;  %v2274_v36 = vadd.f32 %v2273_v34, %v2272_v31 }
 0x424   : > { %v2232_v35 = vpop.f32.mrf.mxu0  ;;  %v2275_v37 = vpop.f32.mrf.mxu1 }
 0x425   : > { %v2233_v38 = vadd.f32 %v2232_v35, %v2231_v33  ;;  %v989_v48 = vmul.f32 %v981_v39, %v981_v39  ;;  %v985_v20 = vmul.f32 0.00390625, %v2274_v36  ;;  %v1009_v28 = vsub.f32 0.0, %v981_v39 }
 0x426   : > { %v2234_v40 = vpop.f32.mrf.mxu0  ;;  %v2276_v41 = vpop.f32.mrf.mxu1 }
 0x427   : > { %v982_v42 = vmul.f32 0.00390625, %v2233_v38  ;;  %v2277_v43 = vadd.f32 %v2276_v41, %v2275_v37  ;;  %v993_v57 = vsub.f32 %v985_v20, %v989_v48 }
 0x428   : > { %v2235_v44 = vpop.f32.mrf.mxu0  ;;  %v2278_v45 = vpop.f32.mrf.mxu1 }
 0x429   : > { %v990_v46 = vmul.f32 %v982_v42, %v982_v42  ;;  %v986_v47 = vmul.f32 0.00390625, %v2277_v43  ;;  %v2236_v49 = vadd.f32 %v2235_v44, %v2234_v40  ;;  %v997_v9 = vmax.f32 %v993_v57, 0.0 }
 0x42a   : > { %v2237_v21 = vpop.f32.mrf.mxu0  ;;  %v2279_v50 = vpop.f32.mrf.mxu1  ;;  %v1010_v33 = vsub.f32 0.0, %v982_v42 }
 0x42b   : > { %v994_v16 = vsub.f32 %v986_v47, %v990_v46  ;;  %v2280_v17 = vadd.f32 %v2279_v50, %v2278_v45  ;;  %v983_v51 = vmul.f32 0.00390625, %v2236_v49  ;;  %v1001_v7 = vadd.f32 1e-05, %v997_v9  ;;  %v1092_v9 = vld [vmem:[#allocation5 + $0x18] sm:$0xff] }
 0x42c   : > { %v2238_v52 = vpop.f32.mrf.mxu0  ;;  %v2281_v53 = vpop.f32.mrf.mxu1 }
 0x42d   : > { %v998_v54 = vmax.f32 %v994_v16, 0.0  ;;  %v987_v55 = vmul.f32 0.00390625, %v2280_v17  ;;  %v2239_v56 = vadd.f32 %v2238_v52, %v2237_v21  ;;  %v991_v12 = vmul.f32 %v983_v51, %v983_v51 }
 0x42e   : > { %v2282_v58 = vpop.f32.mrf.mxu1  ;;  %v1011_v18 = vsub.f32 0.0, %v983_v51 }
 0x42f   : > { %v1002_v13 = vadd.f32 1e-05, %v998_v54  ;;  %v984_v59 = vmul.f32 0.00390625, %v2239_v56  ;;  %v2283_v60 = vadd.f32 %v2282_v58, %v2281_v53  ;;  %v995_v61 = vsub.f32 %v987_v55, %v991_v12 }
 0x431   : > { %2543 = vrsqrt.f32 %v1002_v13  ;;  %v992_v8 = vmul.f32 %v984_v59, %v984_v59  ;;  %v988_v62 = vmul.f32 0.00390625, %v2283_v60  ;;  %v999_v63 = vmax.f32 %v995_v61, 0.0  ;;  %v1089_v61 = vld [vmem:[#allocation5] sm:$0xff] }
 0x432   : > { %v1012_v30 = vsub.f32 0.0, %v984_v59 }
 0x433   : > { %v996_v2 = vsub.f32 %v988_v62, %v992_v8  ;;  %v1003_v3 = vadd.f32 1e-05, %v999_v63  ;;  %v1090_v8 = vld [vmem:[#allocation5 + $0x8] sm:$0xff]  ;;  %v1091_v62 = vld [vmem:[#allocation5 + $0x10] sm:$0xff] }
 0x435   : > { %v1000_v4 = vmax.f32 %v996_v2, 0.0  ;;  %2545 = vrsqrt.f32 %v1003_v3 }
 0x436   : > { %2547 = vrsqrt.f32 %v1001_v7 }
 0x437   : > { %v1004_v10 = vadd.f32 1e-05, %v1000_v4 }
 0x439   : > { %2549 = vrsqrt.f32 %v1004_v10 }
 0x43e   : > { %v2544_v15 = vpop.eup %2543 }
 0x43f   : > { %1024 = vperm.xlu1 %2532, %v2544_v15   ;;  %v1014_v34 = vmul.f32 %v2544_v15, %v1010_v33 }
 0x442   : > { %v2546_v23 = vpop.eup %2545 }
 0x443   : > { %1029 = vperm.xlu1 %2532, %v2546_v23   ;;  %v1015_v24 = vmul.f32 %v2546_v23, %v1011_v18  ;;  %v2548_v26 = vpop.eup %2547 }
 0x444   : > { %v1013_v31 = vmul.f32 %v2548_v26, %v1009_v28 }
 0x445   : > { %1057 = vperm.xlu0 %2533, %v1015_v24  }
 0x446   : > { %v2550_v29 = vpop.eup %2549 }
 0x447   : > { %1019 = vperm.xlu1 %2532, %v2548_v26   ;;  %v1016_v32 = vmul.f32 %v2550_v29, %v1012_v30 }
 0x449   : > { %1034 = vperm.xlu0 %2533, %v2550_v29  }
 0x44b   : > { %1047 = vperm.xlu1 %2532, %v1013_v31  }
 0x44d   : > { %1062 = vperm.xlu0 %2533, %v1016_v32  }
 0x451   : > { %1052 = vperm.xlu0 %2533, %v1014_v34  }
 0x4ba   : > { %v1025_v35 = vpop.permute.xlu1 %1024 }
 0x4bb   : > { %v1039_v21 = vmul.f32 %v1025_v35, %v3127_v11  ;;  %v1040_v50 = vmul.f32 %v1025_v35, %v3130_v14 }
 0x4be   : > { %v1030_v37 = vpop.permute.xlu1 %1029 }
 0x4bf   : > { %v1042_v40 = vmul.f32 %v1030_v37, %v3143_v22  ;;  %v1041_v41 = vmul.f32 %v1030_v37, %v3138_v19 }
 0x4c0   : > { %v1058_v38 = vpop.permute.xlu0 %1057 }
 0x4c1   : > { %v1070_v43 = vadd.f32 %v1058_v38, %v1042_v40  ;;  %v1069_v46 = vadd.f32 %v1058_v38, %v1041_v41 }
 0x4c2   : > { %v1020_v36 = vpop.permute.xlu1 %1019 }
 0x4c3   : > { %v1038_v48 = vmul.f32 %v1020_v36, %v3120_v6  ;;  %v1037_v22 = vmul.f32 %v1020_v36, %v3118_v5  ;;  %v1078_v19 = vmul.f32 0.2, %v1070_v43 }
 0x4c4   : > { %v1035_v39 = vpop.permute.xlu0 %1034 }
 0x4c5   : > { %v1043_v44 = vmul.f32 %v1035_v39, %v3152_v25  ;;  %v1044_v45 = vmul.f32 %v1035_v39, %v3159_v27  ;;  %v1077_v25 = vmul.f32 0.2, %v1069_v46  ;;  %v1086_v6 = vmax.f32 %v1070_v43, %v1078_v19 }
 0x4c6   : > { %v1048_v47 = vpop.permute.xlu1 %1047 }
 0x4c7   : > { %v1066_v16 = vadd.f32 %v1048_v47, %v1038_v48  ;;  %v1065_v52 = vadd.f32 %v1048_v47, %v1037_v22  ;;  %v1085_v11 = vmax.f32 %v1069_v46, %v1077_v25 }
 0x4c8   : > { %v1063_v42 = vpop.permute.xlu0 %1062 }
 0x4c9   : > { %v1071_v20 = vadd.f32 %v1063_v42, %v1043_v44  ;;  %v1072_v49 = vadd.f32 %v1063_v42, %v1044_v45  ;;  %v1074_v57 = vmul.f32 0.2, %v1066_v16  ;;  %v1073_v14 = vmul.f32 0.2, %v1065_v52 }
 0x4cb   : > { %v1079_v17 = vmul.f32 0.2, %v1071_v20  ;;  %v1080_v51 = vmul.f32 0.2, %v1072_v49  ;;  %v1082_v59 = vmax.f32 %v1066_v16, %v1074_v57  ;;  %v1081_v60 = vmax.f32 %v1065_v52, %v1073_v14 }
 0x4cc   : > { %v1053_v27 = vpop.permute.xlu0 %1052 }
 0x4cd   : > { %v1087_v53 = vmax.f32 %v1071_v20, %v1079_v17  ;;  %v1088_v54 = vmax.f32 %v1072_v49, %v1080_v51  ;;  %v1067_v55 = vadd.f32 %v1053_v27, %v1039_v21  ;;  %v1068_v56 = vadd.f32 %v1053_v27, %v1040_v50 }
 0x4cf   : > { %v1075_v12 = vmul.f32 0.2, %v1067_v55  ;;  %v1076_v58 = vmul.f32 0.2, %v1068_v56  ;;  %1129 = vmatprep.subr.mxu0 %v1088_v54 }
 0x4d0   : > { %1130 = vmatpush1.msra.mxu0 %v1087_v53 }
 0x4d1   : > { %v1083_v5 = vmax.f32 %v1067_v55, %v1075_v12  ;;  %v1084_v13 = vmax.f32 %v1068_v56, %v1076_v58  ;;  %1131 = vmatprep.subr.mxu0 %v1086_v6 }
 0x4d2   : > { %1132 = vmatpush1.msra.mxu0 %v1085_v11 }
 0x4d3   : > { %1133 = vmatprep.subr.mxu0 %v1084_v13 }
 0x4d4   : > { %1134 = vmatpush1.msra.mxu0 %v1083_v5 }
 0x4d5   : > { %1135 = vmatprep.subr.mxu0 %v1082_v59 }
 0x4d6   : > { %1136 = vmatpush1.msra.mxu0 %v1081_v60 }
 0x4d7   : > { %2090 = vmatmul.mubr.msk.f32.vlgmr.msra.gmra.mxu0 %vm701_vm2, %v1089_v61  ;;  %2328 = vmatprep.subr.mxu0 %v2731_v1 }
 0x4d8   : > { %1175 = vmatprep.mubr.f32.mxu0 %v2730_v0  ;;  %2329 = vmatpush3.msra.mxu0 %v2731_v1 }
 0x4d9   : > { %2330 = vmatprep.subr.mxu0 %v2731_v1 }
 0x4da   : > { %2331 = vmatpush3.msra.mxu0 %v2731_v1 }
 0x4db   : > { %2091 = vmatmul.mubr.msk.f32.gmra.mxu0 %vm701_vm2, %v1090_v8  ;;  %2332 = vmatprep.subr.mxu0 %v2731_v1 }
 0x4dc   : > { %1181 = vmatprep.mubr.f32.mxu0 %v2730_v0  ;;  %2333 = vmatpush3.msra.mxu0 %v2731_v1 }
 0x4dd   : > { %2334 = vmatprep.subr.mxu0 %v2731_v1 }
 0x4de   : > { %2335 = vmatpush3.msra.mxu0 %v2731_v1 }
 0x4df   : > { %2092 = vmatmul.mubr.msk.f32.gmra.mxu0 %vm701_vm2, %v1091_v62  ;;  %2336 = vmatprep.subr.mxu0 %v2731_v1 }
 0x4e0   : > { %1187 = vmatprep.mubr.f32.mxu0 %v2730_v0  ;;  %2337 = vmatpush3.msra.mxu0 %v2731_v1 }
 0x4e1   : > { %2338 = vmatprep.subr.mxu0 %v2731_v1 }
 0x4e2   : > { %2339 = vmatpush3.msra.mxu0 %v2731_v1 }
 0x4e3   : > { %2093 = vmatmul.mubr.msk.f32.gmra.mxu0 %vm701_vm2, %v1092_v9  ;;  %2340 = vmatprep.subr.mxu0 %v2731_v1 }
 0x4e4   : > { %2341 = vmatpush3.msra.mxu0 %v2731_v1 }
 0x4e5   : > { %2342 = vmatprep.subr.mxu0 %v2731_v1 }
 0x4e6   : > { %2343 = vmatpush3.msra.mxu0 %v2731_v1 }
 0x4e7   : > { %2344 = vmatprep.subr.mxu0 %v2731_v1 }
 0x4e8   : > { %2345 = vmatpush3.msra.mxu0 %v2731_v1 }
 0x4e9   : > { %2346 = vmatprep.subr.mxu0 %v2731_v1 }
 0x4ea   : > { %2347 = vmatpush3.msra.mxu0 %v2731_v1 }
 0x4eb   : > { %2348 = vmatprep.subr.mxu0 %v2731_v1 }
 0x4ec   : > { %2349 = vmatpush3.msra.mxu0 %v2731_v1 }
 0x4ed   : > { %2350 = vmatprep.subr.mxu0 %v2731_v1 }
 0x4ee   : > { %2351 = vmatpush3.msra.mxu0 %v2731_v1 }
 0x4ef   : > { %2352 = vmatprep.subr.mxu0 %v2731_v1 }
 0x4f0   : > { %2353 = vmatpush3.msra.mxu0 %v2731_v1 }
 0x4f1   : > { %2354 = vmatprep.subr.mxu0 %v2731_v1 }
 0x4f2   : > { %2355 = vmatpush3.msra.mxu0 %v2731_v1 }
 0x4f3   : > { %2356 = vmatprep.subr.mxu0 %v2731_v1 }
 0x4f4   : > { %2357 = vmatpush3.msra.mxu0 %v2731_v1 }
 0x4f5   : > { %2358 = vmatprep.subr.mxu0 %v2731_v1 }
 0x4f6   : > { %2359 = vmatpush3.msra.mxu0 %v2731_v1 }
 0x4f7   : > { %2372 = vmatprep.subr.mxu0 %v2731_v1 }
 0x597   : > { %v3238_v63 = vpop.f32.mrf.mxu0 }
 0x598   : > { %v1279_v4 = vmul.f32 %v3238_v63, %v3238_v63 }
 0x599   : > { %v3240_v2 = vpop.f32.mrf.mxu0 }
 0x59a   : > { %v1280_v3 = vmul.f32 %v3240_v2, %v3240_v2  ;;  %1258 = vmatprep.mubr.f32.mxu1 %v3240_v2 }
 0x59b   : > { %v3247_v7 = vpop.f32.mrf.mxu0  ;;  %1259 = vmatmul.mubr.f32.vlgmr.msra.gmra.mxu1 %v3238_v63 }
 0x59c   : > { %1351 = vmatprep.mubr.f32.mxu0 %v1280_v3  ;;  %v1281_v18 = vmul.f32 %v3247_v7, %v3247_v7 }
 0x59d   : > { %v3250_v10 = vpop.f32.mrf.mxu0  ;;  %1352 = vmatmul.mubr.f32.vlgmr.msra.gmra.mxu0 %v1279_v4 }
 0x59e   : > { %v1282_v15 = vmul.f32 %v3250_v10, %v3250_v10  ;;  %1263 = vmatprep.mubr.f32.mxu1 %v3250_v10  ;;  %2373 = vmatpush3.msra.mxu0 %v2731_v1 }
 0x59f   : > { %v3258_v23 = vpop.f32.mrf.mxu0  ;;  %1264 = vmatmul.mubr.f32.gmra.mxu1 %v3247_v7  ;;  %2374 = vmatprep.subr.mxu0 %v2731_v1 }
 0x5a0   : > { %1356 = vmatprep.mubr.f32.mxu0 %v1282_v15  ;;  %2375 = vmatpush3.msra.mxu0 %v2731_v1  ;;  %v1283_v28 = vmul.f32 %v3258_v23, %v3258_v23 }
 0x5a1   : > { %v3263_v24 = vpop.f32.mrf.mxu0  ;;  %1357 = vmatmul.mubr.f32.gmra.mxu0 %v1281_v18  ;;  %2376 = vmatprep.subr.mxu0 %v2731_v1 }
 0x5a2   : > { %v1284_v26 = vmul.f32 %v3263_v24, %v3263_v24  ;;  %1268 = vmatprep.mubr.f32.mxu1 %v3263_v24  ;;  %2377 = vmatpush3.msra.mxu0 %v2731_v1 }
 0x5a3   : > { %v3272_v29 = vpop.f32.mrf.mxu0  ;;  %1269 = vmatmul.mubr.f32.gmra.mxu1 %v3258_v23  ;;  %2378 = vmatprep.subr.mxu0 %v2731_v1 }
 0x5a4   : > { %1361 = vmatprep.mubr.f32.mxu0 %v1284_v26  ;;  %2379 = vmatpush3.msra.mxu0 %v2731_v1  ;;  %v1285_v30 = vmul.f32 %v3272_v29, %v3272_v29 }
 0x5a5   : > { %v3279_v31 = vpop.f32.mrf.mxu0  ;;  %1362 = vmatmul.mubr.f32.gmra.mxu0 %v1283_v28  ;;  %2380 = vmatprep.subr.mxu0 %v2731_v1 }
 0x5a6   : > { %v1286_v32 = vmul.f32 %v3279_v31, %v3279_v31  ;;  %1273 = vmatprep.mubr.f32.mxu1 %v3279_v31  ;;  %2381 = vmatpush3.msra.mxu0 %v2731_v1 }
 0x5a7   : > { %1274 = vmatmul.mubr.f32.gmra.mxu1 %v3272_v29  ;;  %2382 = vmatprep.subr.mxu0 %v2731_v1 }
 0x5a8   : > { %1366 = vmatprep.mubr.f32.mxu0 %v1286_v32  ;;  %1560 = vmatprep.mubr.f32.mxu1 %v2730_v0 }
 0x5a9   : > { %1367 = vmatmul.mubr.f32.gmra.mxu0 %v1285_v30 }
 0x5aa   : > { %2383 = vmatpush3.msra.mxu0 %v2731_v1 }
 0x5ab   : > { %2384 = vmatprep.subr.mxu0 %v2731_v1 }
 0x5ac   : > { %2385 = vmatpush3.msra.mxu0 %v2731_v1 }
 0x5ad   : > { %2386 = vmatprep.subr.mxu0 %v2731_v1 }
 0x5ae   : > { %2387 = vmatpush3.msra.mxu0 %v2731_v1 }
 0x5af   : > { %2388 = vmatprep.subr.mxu0 %v2731_v1 }
 0x5b0   : > { %2389 = vmatpush3.msra.mxu0 %v2731_v1 }
 0x5b1   : > { %2390 = vmatprep.subr.mxu0 %v2731_v1 }
 0x5b2   : > { %2391 = vmatpush3.msra.mxu0 %v2731_v1 }
 0x5b3   : > { %2392 = vmatprep.subr.mxu0 %v2731_v1 }
 0x5b4   : > { %2393 = vmatpush3.msra.mxu0 %v2731_v1 }
 0x5b5   : > { %2394 = vmatprep.subr.mxu0 %v2731_v1 }
 0x5b6   : > { %2395 = vmatpush3.msra.mxu0 %v2731_v1 }
 0x5b7   : > { %2396 = vmatprep.subr.mxu0 %v2731_v1 }
 0x5b8   : > { %2397 = vmatpush3.msra.mxu0 %v2731_v1 }
 0x5b9   : > { %2398 = vmatprep.subr.mxu0 %v2731_v1 }
 0x5ba   : > { %2399 = vmatpush3.msra.mxu0 %v2731_v1 }
 0x5bb   : > { %2400 = vmatprep.subr.mxu0 %v2731_v1 }
 0x5bc   : > { %2401 = vmatpush3.msra.mxu0 %v2731_v1 }
 0x5bd   : > { %2402 = vmatprep.subr.mxu0 %v2731_v1 }
 0x5be   : > { %2403 = vmatpush3.msra.mxu0 %v2731_v1 }
 0x65b   : > { %v2316_v33 = vpop.f32.mrf.mxu1 }
 0x65d   : > { %v2317_v34 = vpop.f32.mrf.mxu1  ;;  %v2360_v35 = vpop.f32.mrf.mxu0 }
 0x65e   : > { %v2318_v37 = vadd.f32 %v2317_v34, %v2316_v33 }
 0x65f   : > { %v2319_v38 = vpop.f32.mrf.mxu1  ;;  %v2361_v36 = vpop.f32.mrf.mxu0 }
 0x660   : > { %v1372_v43 = vmul.f32 0.00390625, %v2318_v37  ;;  %v2362_v44 = vadd.f32 %v2361_v36, %v2360_v35 }
 0x661   : > { %v2320_v40 = vpop.f32.mrf.mxu1  ;;  %v2363_v41 = vpop.f32.mrf.mxu0 }
 0x662   : > { %v2321_v39 = vadd.f32 %v2320_v40, %v2319_v38  ;;  %v1380_v50 = vmul.f32 %v1372_v43, %v1372_v43  ;;  %v1376_v22 = vmul.f32 0.00390625, %v2362_v44  ;;  %v1400_v32 = vsub.f32 0.0, %v1372_v43 }
 0x663   : > { %v2322_v45 = vpop.f32.mrf.mxu1  ;;  %v2364_v46 = vpop.f32.mrf.mxu0 }
 0x664   : > { %v1373_v47 = vmul.f32 0.00390625, %v2321_v39  ;;  %v2365_v42 = vadd.f32 %v2364_v46, %v2363_v41  ;;  %v1384_v6 = vsub.f32 %v1376_v22, %v1380_v50 }
 0x665   : > { %v2323_v48 = vpop.f32.mrf.mxu1  ;;  %v2366_v20 = vpop.f32.mrf.mxu0 }
 0x666   : > { %v1381_v49 = vmul.f32 %v1373_v47, %v1373_v47  ;;  %v1377_v21 = vmul.f32 0.00390625, %v2365_v42  ;;  %v2324_v19 = vadd.f32 %v2323_v48, %v2322_v45  ;;  %v1388_v60 = vmax.f32 %v1384_v6, 0.0 }
 0x667   : > { %v2325_v16 = vpop.f32.mrf.mxu1  ;;  %v2367_v17 = vpop.f32.mrf.mxu0  ;;  %v1401_v38 = vsub.f32 0.0, %v1373_v47 }
 0x668   : > { %v1385_v51 = vsub.f32 %v1377_v21, %v1381_v49  ;;  %v2368_v25 = vadd.f32 %v2367_v17, %v2366_v20  ;;  %v1374_v52 = vmul.f32 0.00390625, %v2324_v19  ;;  %v1392_v3 = vadd.f32 1e-05, %v1388_v60  ;;  %v1483_v60 = vld [vmem:[#allocation7 + $0x18] sm:$0xff] }
 0x669   : > { %v2326_v27 = vpop.f32.mrf.mxu1  ;;  %v2369_v53 = vpop.f32.mrf.mxu0 }
 0x66a   : > { %v1389_v54 = vmax.f32 %v1385_v51, 0.0  ;;  %v1378_v55 = vmul.f32 0.00390625, %v2368_v25  ;;  %v2327_v56 = vadd.f32 %v2326_v27, %v2325_v16  ;;  %v1382_v57 = vmul.f32 %v1374_v52, %v1374_v52 }
 0x66b   : > { %v2370_v12 = vpop.f32.mrf.mxu0  ;;  %v1402_v18 = vsub.f32 0.0, %v1374_v52 }
 0x66c   : > { %v1393_v58 = vadd.f32 1e-05, %v1389_v54  ;;  %v1375_v11 = vmul.f32 0.00390625, %v2327_v56  ;;  %v2371_v14 = vadd.f32 %v2370_v12, %v2369_v53  ;;  %v1386_v5 = vsub.f32 %v1378_v55, %v1382_v57 }
 0x66e   : > { %2551 = vrsqrt.f32 %v1393_v58  ;;  %v1383_v13 = vmul.f32 %v1375_v11, %v1375_v11  ;;  %v1379_v59 = vmul.f32 0.00390625, %v2371_v14  ;;  %v1390_v61 = vmax.f32 %v1386_v5, 0.0  ;;  %v1480_v5 = vld [vmem:[#allocation7] sm:$0xff] }
 0x66f   : > { %v1403_v34 = vsub.f32 0.0, %v1375_v11 }
 0x670   : > { %v1387_v8 = vsub.f32 %v1379_v59, %v1383_v13  ;;  %v1394_v62 = vadd.f32 1e-05, %v1390_v61  ;;  %v1481_v13 = vld [vmem:[#allocation7 + $0x8] sm:$0xff]  ;;  %v1482_v59 = vld [vmem:[#allocation7 + $0x10] sm:$0xff] }
 0x672   : > { %v1391_v9 = vmax.f32 %v1387_v8, 0.0  ;;  %2553 = vrsqrt.f32 %v1394_v62 }
 0x673   : > { %2555 = vrsqrt.f32 %v1392_v3 }
 0x674   : > { %v1395_v4 = vadd.f32 1e-05, %v1391_v9 }
 0x676   : > { %2557 = vrsqrt.f32 %v1395_v4 }
 0x67b   : > { %v2552_v15 = vpop.eup %2551 }
 0x67c   : > { %1415 = vperm.xlu1 %2532, %v2552_v15   ;;  %v1405_v36 = vmul.f32 %v2552_v15, %v1401_v38 }
 0x67f   : > { %v2554_v26 = vpop.eup %2553 }
 0x680   : > { %1420 = vperm.xlu1 %2532, %v2554_v26   ;;  %v1406_v28 = vmul.f32 %v2554_v26, %v1402_v18  ;;  %v2556_v30 = vpop.eup %2555 }
 0x681   : > { %v1404_v35 = vmul.f32 %v2556_v30, %v1400_v32 }
 0x682   : > { %1448 = vperm.xlu0 %2533, %v1406_v28  }
 0x683   : > { %v2558_v33 = vpop.eup %2557 }
 0x684   : > { %1410 = vperm.xlu1 %2532, %v2556_v30   ;;  %v1407_v37 = vmul.f32 %v2558_v33, %v1403_v34 }
 0x686   : > { %1425 = vperm.xlu0 %2533, %v2558_v33  }
 0x688   : > { %1438 = vperm.xlu1 %2532, %v1404_v35  }
 0x68a   : > { %1453 = vperm.xlu0 %2533, %v1407_v37  }
 0x68e   : > { %1443 = vperm.xlu0 %2533, %v1405_v36  }
 0x6f7   : > { %v1416_v40 = vpop.permute.xlu1 %1415 }
 0x6f8   : > { %v1430_v16 = vmul.f32 %v1416_v40, %v3247_v7  ;;  %v1431_v17 = vmul.f32 %v1416_v40, %v3250_v10 }
 0x6fb   : > { %v1421_v41 = vpop.permute.xlu1 %1420 }
 0x6fc   : > { %v1433_v45 = vmul.f32 %v1421_v41, %v3263_v24  ;;  %v1432_v46 = vmul.f32 %v1421_v41, %v3258_v23 }
 0x6fd   : > { %v1449_v39 = vpop.permute.xlu0 %1448 }
 0x6fe   : > { %v1461_v42 = vadd.f32 %v1449_v39, %v1433_v45  ;;  %v1460_v49 = vadd.f32 %v1449_v39, %v1432_v46 }
 0x6ff   : > { %v1411_v44 = vpop.permute.xlu1 %1410 }
 0x700   : > { %v1429_v50 = vmul.f32 %v1411_v44, %v3240_v2  ;;  %v1428_v24 = vmul.f32 %v1411_v44, %v3238_v63  ;;  %v1469_v23 = vmul.f32 0.2, %v1461_v42 }
 0x701   : > { %v1426_v43 = vpop.permute.xlu0 %1425 }
 0x702   : > { %v1434_v48 = vmul.f32 %v1426_v43, %v3272_v29  ;;  %v1435_v20 = vmul.f32 %v1426_v43, %v3279_v31  ;;  %v1468_v29 = vmul.f32 0.2, %v1460_v49  ;;  %v1477_v2 = vmax.f32 %v1461_v42, %v1469_v23 }
 0x703   : > { %v1439_v21 = vpop.permute.xlu1 %1438 }
 0x704   : > { %v1457_v51 = vadd.f32 %v1439_v21, %v1429_v50  ;;  %v1456_v27 = vadd.f32 %v1439_v21, %v1428_v24  ;;  %v1476_v7 = vmax.f32 %v1460_v49, %v1468_v29 }
 0x705   : > { %v1454_v47 = vpop.permute.xlu0 %1453 }
 0x706   : > { %v1462_v22 = vadd.f32 %v1454_v47, %v1434_v48  ;;  %v1463_v19 = vadd.f32 %v1454_v47, %v1435_v20  ;;  %v1465_v6 = vmul.f32 0.2, %v1457_v51  ;;  %v1464_v10 = vmul.f32 0.2, %v1456_v27 }
 0x708   : > { %v1470_v25 = vmul.f32 0.2, %v1462_v22  ;;  %v1471_v52 = vmul.f32 0.2, %v1463_v19  ;;  %v1473_v11 = vmax.f32 %v1457_v51, %v1465_v6  ;;  %v1472_v14 = vmax.f32 %v1456_v27, %v1464_v10 }
 0x709   : > { %v1444_v31 = vpop.permute.xlu0 %1443 }
 0x70a   : > { %v1478_v53 = vmax.f32 %v1462_v22, %v1470_v25  ;;  %v1479_v54 = vmax.f32 %v1463_v19, %v1471_v52  ;;  %v1458_v55 = vadd.f32 %v1444_v31, %v1430_v16  ;;  %v1459_v56 = vadd.f32 %v1444_v31, %v1431_v17 }
 0x70c   : > { %v1466_v57 = vmul.f32 0.2, %v1458_v55  ;;  %v1467_v12 = vmul.f32 0.2, %v1459_v56  ;;  %1520 = vmatprep.subr.mxu1 %v1479_v54 }
 0x70d   : > { %1521 = vmatpush1.msra.mxu1 %v1478_v53 }
 0x70e   : > { %v1474_v63 = vmax.f32 %v1458_v55, %v1466_v57  ;;  %v1475_v58 = vmax.f32 %v1459_v56, %v1467_v12  ;;  %1522 = vmatprep.subr.mxu1 %v1477_v2 }
 0x70f   : > { %1523 = vmatpush1.msra.mxu1 %v1476_v7 }
 0x710   : > { %1524 = vmatprep.subr.mxu1 %v1475_v58 }
 0x711   : > { %1525 = vmatpush1.msra.mxu1 %v1474_v63 }
 0x712   : > { %1526 = vmatprep.subr.mxu1 %v1473_v11 }
 0x713   : > { %1527 = vmatpush1.msra.mxu1 %v1472_v14 }
 0x714   : > { %2094 = vmatmul.mubr.msk.f32.vlgmr.msra.gmra.mxu1 %vm701_vm2, %v1480_v5  ;;  %2416 = vmatprep.subr.mxu1 %v2731_v1 }
 0x715   : > { %1566 = vmatprep.mubr.f32.mxu1 %v2730_v0  ;;  %2417 = vmatpush3.msra.mxu1 %v2731_v1 }
 0x716   : > { %2418 = vmatprep.subr.mxu1 %v2731_v1 }
 0x717   : > { %2419 = vmatpush3.msra.mxu1 %v2731_v1 }
 0x718   : > { %2095 = vmatmul.mubr.msk.f32.gmra.mxu1 %vm701_vm2, %v1481_v13  ;;  %2420 = vmatprep.subr.mxu1 %v2731_v1 }
 0x719   : > { %1572 = vmatprep.mubr.f32.mxu1 %v2730_v0  ;;  %2421 = vmatpush3.msra.mxu1 %v2731_v1 }
 0x71a   : > { %2422 = vmatprep.subr.mxu1 %v2731_v1 }
 0x71b   : > { %2423 = vmatpush3.msra.mxu1 %v2731_v1 }
 0x71c   : > { %2096 = vmatmul.mubr.msk.f32.gmra.mxu1 %vm701_vm2, %v1482_v59  ;;  %2424 = vmatprep.subr.mxu1 %v2731_v1 }
 0x71d   : > { %1578 = vmatprep.mubr.f32.mxu1 %v2730_v0  ;;  %2425 = vmatpush3.msra.mxu1 %v2731_v1 }
 0x71e   : > { %2426 = vmatprep.subr.mxu1 %v2731_v1 }
 0x71f   : > { %2427 = vmatpush3.msra.mxu1 %v2731_v1 }
 0x720   : > { %2097 = vmatmul.mubr.msk.f32.gmra.mxu1 %vm701_vm2, %v1483_v60  ;;  %2428 = vmatprep.subr.mxu1 %v2731_v1 }
 0x721   : > { %2429 = vmatpush3.msra.mxu1 %v2731_v1 }
 0x722   : > { %2430 = vmatprep.subr.mxu1 %v2731_v1 }
 0x723   : > { %2431 = vmatpush3.msra.mxu1 %v2731_v1 }
 0x724   : > { %2432 = vmatprep.subr.mxu1 %v2731_v1 }
 0x725   : > { %2433 = vmatpush3.msra.mxu1 %v2731_v1 }
 0x726   : > { %2434 = vmatprep.subr.mxu1 %v2731_v1 }
 0x727   : > { %2435 = vmatpush3.msra.mxu1 %v2731_v1 }
 0x728   : > { %2436 = vmatprep.subr.mxu1 %v2731_v1 }
 0x729   : > { %2437 = vmatpush3.msra.mxu1 %v2731_v1 }
 0x72a   : > { %2438 = vmatprep.subr.mxu1 %v2731_v1 }
 0x72b   : > { %2439 = vmatpush3.msra.mxu1 %v2731_v1 }
 0x72c   : > { %2440 = vmatprep.subr.mxu1 %v2731_v1 }
 0x72d   : > { %2441 = vmatpush3.msra.mxu1 %v2731_v1 }
 0x72e   : > { %2442 = vmatprep.subr.mxu1 %v2731_v1 }
 0x72f   : > { %2443 = vmatpush3.msra.mxu1 %v2731_v1 }
 0x730   : > { %2444 = vmatprep.subr.mxu1 %v2731_v1 }
 0x731   : > { %2445 = vmatpush3.msra.mxu1 %v2731_v1 }
 0x732   : > { %2446 = vmatprep.subr.mxu1 %v2731_v1 }
 0x733   : > { %2447 = vmatpush3.msra.mxu1 %v2731_v1 }
 0x7d4   : > { %v3357_v61 = vpop.f32.mrf.mxu1 }
 0x7d5   : > { %v1670_v9 = vmul.f32 %v3357_v61, %v3357_v61 }
 0x7d6   : > { %v3359_v8 = vpop.f32.mrf.mxu1 }
 0x7d7   : > { %v1671_v62 = vmul.f32 %v3359_v8, %v3359_v8  ;;  %1649 = vmatprep.mubr.f32.mxu0 %v3359_v8 }
 0x7d8   : > { %v3366_v3 = vpop.f32.mrf.mxu1  ;;  %1650 = vmatmul.mubr.f32.vlgmr.msra.gmra.mxu0 %v3357_v61 }
 0x7d9   : > { %1742 = vmatprep.mubr.f32.mxu1 %v1671_v62  ;;  %v1672_v15 = vmul.f32 %v3366_v3, %v3366_v3 }
 0x7da   : > { %v3369_v4 = vpop.f32.mrf.mxu1  ;;  %1743 = vmatmul.mubr.f32.vlgmr.msra.gmra.mxu1 %v1670_v9 }
 0x7db   : > { %v1673_v1 = vmul.f32 %v3369_v4, %v3369_v4  ;;  %1654 = vmatprep.mubr.f32.mxu0 %v3369_v4 }
 0x7dc   : > { %v3376_v18 = vpop.f32.mrf.mxu1  ;;  %1655 = vmatmul.mubr.f32.gmra.mxu0 %v3366_v3 }
 0x7dd   : > { %1747 = vmatprep.mubr.f32.mxu1 %v1673_v1  ;;  %v1674_v30 = vmul.f32 %v3376_v18, %v3376_v18 }
 0x7de   : > { %v3379_v26 = vpop.f32.mrf.mxu1  ;;  %1748 = vmatmul.mubr.f32.gmra.mxu1 %v1672_v15 }
 0x7df   : > { %v1675_v28 = vmul.f32 %v3379_v26, %v3379_v26  ;;  %1659 = vmatprep.mubr.f32.mxu0 %v3379_v26 }
 0x7e0   : > { %v3386_v32 = vpop.f32.mrf.mxu1  ;;  %1660 = vmatmul.mubr.f32.gmra.mxu0 %v3376_v18 }
 0x7e1   : > { %1752 = vmatprep.mubr.f32.mxu1 %v1675_v28  ;;  %v1676_v33 = vmul.f32 %v3386_v32, %v3386_v32 }
 0x7e2   : > { %v3391_v34 = vpop.f32.mrf.mxu1  ;;  %1753 = vmatmul.mubr.f32.gmra.mxu1 %v1674_v30 }
 0x7e3   : > { %v1677_v35 = vmul.f32 %v3391_v34, %v3391_v34  ;;  %1664 = vmatprep.mubr.f32.mxu0 %v3391_v34 }
 0x7e4   : > { %1665 = vmatmul.mubr.f32.gmra.mxu0 %v3386_v32 }
 0x7e5   : > { %1757 = vmatprep.mubr.f32.mxu1 %v1677_v35  ;;  %1939 = vmatprep.mubr.f32.mxu0 %v2730_v0 }
 0x7e6   : > { %1758 = vmatmul.mubr.f32.gmra.mxu1 %v1676_v33 }
 0x898   : > { %v2404_v37 = vpop.f32.mrf.mxu0 }
 0x89a   : > { %v2405_v38 = vpop.f32.mrf.mxu0  ;;  %v2448_v36 = vpop.f32.mrf.mxu1 }
 0x89b   : > { %v2406_v40 = vadd.f32 %v2405_v38, %v2404_v37 }
 0x89c   : > { %v2407_v41 = vpop.f32.mrf.mxu0  ;;  %v2449_v39 = vpop.f32.mrf.mxu1 }
 0x89d   : > { %v1763_v43 = vmul.f32 0.00390625, %v2406_v40  ;;  %v2450_v42 = vadd.f32 %v2449_v39, %v2448_v36 }
 0x89e   : > { %v2408_v44 = vpop.f32.mrf.mxu0  ;;  %v2451_v45 = vpop.f32.mrf.mxu1 }
 0x89f   : > { %v2409_v46 = vadd.f32 %v2408_v44, %v2407_v41  ;;  %v1771_v19 = vmul.f32 %v1763_v43, %v1763_v43  ;;  %v1767_v16 = vmul.f32 0.00390625, %v2450_v42  ;;  %v1791_v30 = vsub.f32 0.0, %v1763_v43 }
 0x8a0   : > { %v2410_v48 = vpop.f32.mrf.mxu0  ;;  %v2452_v20 = vpop.f32.mrf.mxu1 }
 0x8a1   : > { %v1764_v49 = vmul.f32 0.00390625, %v2409_v46  ;;  %v2453_v21 = vadd.f32 %v2452_v20, %v2451_v45  ;;  %v1775_v55 = vsub.f32 %v1767_v16, %v1771_v19 }
 0x8a2   : > { %v2411_v47 = vpop.f32.mrf.mxu0  ;;  %v2454_v50 = vpop.f32.mrf.mxu1 }
 0x8a3   : > { %v1772_v22 = vmul.f32 %v1764_v49, %v1764_v49  ;;  %v1768_v0 = vmul.f32 0.00390625, %v2453_v21  ;;  %v2412_v17 = vadd.f32 %v2411_v47, %v2410_v48  ;;  %v1779_v58 = vmax.f32 %v1775_v55, 0.0 }
 0x8a4   : > { %v2413_v24 = vpop.f32.mrf.mxu0  ;;  %v2455_v23 = vpop.f32.mrf.mxu1  ;;  %v1792_v36 = vsub.f32 0.0, %v1764_v49 }
 0x8a5   : > { %v1776_v51 = vsub.f32 %v1768_v0, %v1772_v22  ;;  %v2456_v25 = vadd.f32 %v2455_v23, %v2454_v50  ;;  %v1765_v52 = vmul.f32 0.00390625, %v2412_v17  ;;  %v1783_v59 = vadd.f32 1e-05, %v1779_v58 }
 0x8a6   : > { %v2414_v29 = vpop.f32.mrf.mxu0  ;;  %v2457_v27 = vpop.f32.mrf.mxu1 }
 0x8a7   : > { %v1780_v31 = vmax.f32 %v1776_v51, 0.0  ;;  %v1769_v53 = vmul.f32 0.00390625, %v2456_v25  ;;  %v2415_v54 = vadd.f32 %v2414_v29, %v2413_v24  ;;  %v1773_v56 = vmul.f32 %v1765_v52, %v1765_v52 }
 0x8a8   : > { %v2458_v2 = vpop.f32.mrf.mxu1  ;;  %v1793_v9 = vsub.f32 0.0, %v1765_v52 }
 0x8a9   : > { %v1784_v6 = vadd.f32 1e-05, %v1780_v31  ;;  %v1766_v57 = vmul.f32 0.00390625, %v2415_v54  ;;  %v2459_v12 = vadd.f32 %v2458_v2, %v2457_v27  ;;  %v1777_v7 = vsub.f32 %v1769_v53, %v1773_v56 }
 0x8ab   : > { %2559 = vrsqrt.f32 %v1784_v6  ;;  %v1774_v10 = vmul.f32 %v1766_v57, %v1766_v57  ;;  %v1770_v63 = vmul.f32 0.00390625, %v2459_v12  ;;  %v1781_v11 = vmax.f32 %v1777_v7, 0.0 }
 0x8ac   : > { %v1794_v35 = vsub.f32 0.0, %v1766_v57  ;;  %v1871_v57 = vld [vmem:[%s3452_s5] sm:$0xf] }
 0x8ad   : > { %v1778_v14 = vsub.f32 %v1770_v63, %v1774_v10  ;;  %v1785_v5 = vadd.f32 1e-05, %v1781_v11 }
 0x8af   : > { %v1782_v13 = vmax.f32 %v1778_v14, 0.0  ;;  %2561 = vrsqrt.f32 %v1785_v5 }
 0x8b0   : > { %2563 = vrsqrt.f32 %v1783_v59 }
 0x8b1   : > { %v1786_v60 = vadd.f32 1e-05, %v1782_v13 }
 0x8b3   : > { %2565 = vrsqrt.f32 %v1786_v60 }
 0x8b8   : > { %v2560_v62 = vpop.eup %2559 }
 0x8b9   : > { %1806 = vperm.xlu1 %2532, %v2560_v62   ;;  %v1796_v40 = vmul.f32 %v2560_v62, %v1792_v36 }
 0x8bc   : > { %v2562_v1 = vpop.eup %2561 }
 0x8bd   : > { %1811 = vperm.xlu1 %2532, %v2562_v1   ;;  %v1797_v15 = vmul.f32 %v2562_v1, %v1793_v9  ;;  %v2564_v28 = vpop.eup %2563 }
 0x8be   : > { %v1795_v37 = vmul.f32 %v2564_v28, %v1791_v30 }
 0x8bf   : > { %1839 = vperm.xlu0 %2533, %v1797_v15  }
 0x8c0   : > { %v2566_v33 = vpop.eup %2565 }
 0x8c1   : > { %1801 = vperm.xlu1 %2532, %v2564_v28   ;;  %v1798_v38 = vmul.f32 %v2566_v33, %v1794_v35 }
 0x8c3   : > { %1816 = vperm.xlu0 %2533, %v2566_v33  }
 0x8c5   : > { %1829 = vperm.xlu1 %2532, %v1795_v37  }
 0x8c7   : > { %1844 = vperm.xlu0 %2533, %v1798_v38  }
 0x8cb   : > { %1834 = vperm.xlu0 %2533, %v1796_v40  }
 0x934   : > { %v1807_v41 = vpop.permute.xlu1 %1806 }
 0x935   : > { %v1821_v16 = vmul.f32 %v1807_v41, %v3366_v3  ;;  %v1822_v17 = vmul.f32 %v1807_v41, %v3369_v4 }
 0x938   : > { %v1812_v39 = vpop.permute.xlu1 %1811 }
 0x939   : > { %v1824_v46 = vmul.f32 %v1812_v39, %v3379_v26  ;;  %v1823_v42 = vmul.f32 %v1812_v39, %v3376_v18 }
 0x93a   : > { %v1840_v44 = vpop.permute.xlu0 %1839 }
 0x93b   : > { %v1852_v48 = vadd.f32 %v1840_v44, %v1824_v46  ;;  %v1851_v47 = vadd.f32 %v1840_v44, %v1823_v42 }
 0x93c   : > { %v1802_v45 = vpop.permute.xlu1 %1801 }
 0x93d   : > { %v1820_v22 = vmul.f32 %v1802_v45, %v3359_v8  ;;  %v1819_v26 = vmul.f32 %v1802_v45, %v3357_v61  ;;  %v1860_v18 = vmul.f32 0.2, %v1852_v48 }
 0x93e   : > { %v1817_v43 = vpop.permute.xlu0 %1816 }
 0x93f   : > { %v1825_v20 = vmul.f32 %v1817_v43, %v3386_v32  ;;  %v1826_v21 = vmul.f32 %v1817_v43, %v3391_v34  ;;  %v1859_v32 = vmul.f32 0.2, %v1851_v47  ;;  %v1868_v8 = vmax.f32 %v1852_v48, %v1860_v18 }
 0x940   : > { %v1830_v50 = vpop.permute.xlu1 %1829 }
 0x941   : > { %v1848_v24 = vadd.f32 %v1830_v50, %v1820_v22  ;;  %v1847_v25 = vadd.f32 %v1830_v50, %v1819_v26  ;;  %v1867_v3 = vmax.f32 %v1851_v47, %v1859_v32 }
 0x942   : > { %v1845_v49 = vpop.permute.xlu0 %1844 }
 0x943   : > { %v1853_v0 = vadd.f32 %v1845_v49, %v1825_v20  ;;  %v1854_v19 = vadd.f32 %v1845_v49, %v1826_v21  ;;  %v1856_v53 = vmul.f32 0.2, %v1848_v24  ;;  %v1855_v4 = vmul.f32 0.2, %v1847_v25 }
 0x945   : > { %v1861_v23 = vmul.f32 0.2, %v1853_v0  ;;  %v1862_v51 = vmul.f32 0.2, %v1854_v19  ;;  %v1864_v2 = vmax.f32 %v1848_v24, %v1856_v53  ;;  %v1863_v6 = vmax.f32 %v1847_v25, %v1855_v4 }
 0x946   : > { %v1835_v34 = vpop.permute.xlu0 %1834 }
 0x947   : > { %v1869_v52 = vmax.f32 %v1853_v0, %v1861_v23  ;;  %v1870_v29 = vmax.f32 %v1854_v19, %v1862_v51  ;;  %v1849_v27 = vadd.f32 %v1835_v34, %v1821_v16  ;;  %v1850_v31 = vadd.f32 %v1835_v34, %v1822_v17 }
 0x949   : > { %v1857_v54 = vmul.f32 0.2, %v1849_v27  ;;  %v1858_v55 = vmul.f32 0.2, %v1850_v31  ;;  %1899 = vmatprep.subr.mxu0 %v1870_v29 }
 0x94a   : > { %1900 = vmatpush1.msra.mxu0 %v1869_v52 }
 0x94b   : > { %v1865_v61 = vmax.f32 %v1849_v27, %v1857_v54  ;;  %v1866_v56 = vmax.f32 %v1850_v31, %v1858_v55  ;;  %1901 = vmatprep.subr.mxu0 %v1868_v8 }
 0x94c   : > { %1902 = vmatpush1.msra.mxu0 %v1867_v3 }
 0x94d   : > { %1903 = vmatprep.subr.mxu0 %v1866_v56 }
 0x94e   : > { %1904 = vmatpush1.msra.mxu0 %v1865_v61 }
 0x94f   : > { %1905 = vmatprep.subr.mxu0 %v1864_v2 }
 0x950   : > { %1906 = vmatpush1.msra.mxu0 %v1863_v6 }
 0x951   : > { %2098 = vmatmul.mubr.msk.f32.vlgmr.msra.gmra.mxu0 %vm701_vm2, %v1871_v57 }
 0xa11   : > { %v1941_v12 = vpop.f32.mrf.mxu0 }
 0xa12   : > { %v2099_v7 = vmul.f32 -1.442695, %v1941_v12 }
 0xa13   : > { %v1943_v10 = vpop.f32.mrf.mxu0 }
 0xa14   : > { %2567 = vpow2.f32 %v2099_v7  ;;  %v2100_v63 = vmul.f32 -1.442695, %v1943_v10 }
 0xa16   : > { %2569 = vpow2.f32 %v2100_v63 }
 0xa21   : > { %v2568_v58 = vpop.eup %2567 }
 0xa22   : > { %v1952_v11 = vadd.f32 1.0, %v2568_v58 }
 0xa23   : > { %v2570_v14 = vpop.eup %2569 }
 0xa24   : > { %v1953_v5 = vadd.f32 1.0, %v2570_v14  ;;  %2571 = vrcp.f32 %v1952_v11 }
 0xa26   : > { %2573 = vrcp.f32 %v1953_v5 }
 0xa31   : > { %v2572_v13 = vpop.eup %2571 }
 0xa33   : > { %v2574_v59 = vpop.eup %2573 }
 0xa34   : > { %v1960_v60 = vcombine.low %v2572_v13, %v2574_v59 }
 0xa36   : > { %1962 = vst [vmem:[%s296_s17] sm:$0xff] %v1960_v60 }
 0xa37   : > { %2668 = shalt.err (!%p2665_p9)
}
 0xa38   : > { %s2669_s3 = scalar_lea.hbm %s1976_s12, 128  ;;  %s2673_s29 = scalar_lea.hbm %s3453_s6, 256 }
 0xa39   : > { %p2670_p13 = scmp.ne.s32.totalorder %s1976_s12, %s2669_s3  ;;  %p2674_p4 = scmp.lt.s32.totalorder %s1976_s12, %s3453_s6 }
 0xa3a   : > { %p2675_p8 = scmp.lt.s32.totalorder %s2673_s29, %s2669_s3 }
 0xa3b   : > { %p2671_p5 = pnand %p2670_p13, %p3471_p0 }
 0xa3c   : > { %p2676_p3 = por %p2675_p8, %p2674_p4 }
 0xa3d   : > { %p2672_p10 = pneg %p2671_p5 }
 0xa3f   : > { %p2677_p11 = pnand %p2676_p3, %p2672_p10 }
 0xa41   : > { %2680 = shalt.err (!%p2677_p11)
}
 0xa42   : > { %2470 = dma.vmem_to_hbm [thread:$0]  (%p3471_p0), %s1979_s10, 128, %s1976_s12, %s1964_s8  }
 0xa43 PF: > { %s1990_s16 = sand.u32 1, %s2711_s21   ;;  %p3472_p1 = scmp.ne.s32.totalorder %s3460_s28, 0 }
 0xa44   : > { %p3473_p2 = scmp.ge.s32.totalorder %s2723_s24, 2  ;;  %s1991_s17 = scalar_lea.sflag [#allocation4], %s1990_s16 }
 0xa46   : > { %p2484_p6 = pnand %p3473_p2, %p3472_p1 }
 0xa48   : > { %p2485_p12 = pneg %p2484_p6 }
 0xa4a   : > { %2706 = dma.done.wait (%p2485_p12), %s1991_s17, 128  }
 0xa4b   : > { %2708 = vsyncadd (%p2485_p12), %s1991_s17, 4294967168  ;;  %p20_p7 = scmp.ge.s32.totalorder %s2841_s19, 4   ;;  %s3474_s21 = smov %s2715_s22 }
 0xa4c   : > { %s3475_s22 = smov %s2719_s23  ;;  %s3476_s23 = smov %s2857_s7 }
 0xa4d   : > { %s3477_s24 = smov %s2841_s19  ;;  %22 = sbr.rel (!%p20_p7) target bundleno = 8 (0x8), region = 97 }
 0xa52   :  { %1996 = vsyncpa [#allocation3], 1 }
 0xa53   :  { %1998 = vsyncpa [#allocation3 + $0x1], 1 }
 0xa54   :  { %1999 = vsyncpa [#allocation6], 1 }
 0xa55   :  { %2000 = vsyncpa [#allocation4], 1 }
 0xa56   :  { %2002 = vsyncpa [#allocation4 + $0x1], 1 }

</bundles_post_ra>
